<compile_context>
chip_gen: v7x
topology: tpu7x:2x2x1
jax: 0.10.0
libtpu: 0.0.40
codegen_flags: <defaults>
</compile_context>

<pallas_src>
import jax
import jax.numpy as jnp
from jax import lax
from jax.experimental import pallas as pl
from jax.experimental.pallas import tpu as pltpu


def _round_up(x, m):
    return (x + m - 1) // m * m


def _gelu(x, approximate):
    if approximate:
        # tanh formulation -> EUP slot (nearly free); tiny deviation from torch default
        c = 0.7978845608028654  # sqrt(2/pi)
        return 0.5 * x * (1.0 + jnp.tanh(c * (x + 0.044715 * x * x * x)))
    # exact erf formulation == torch.nn.GELU() default
    return 0.5 * x * (1.0 + lax.erf(x * 0.7071067811865476))


def _vmem_cap_bytes():
    # Generation-aware scoped-VMEM ceiling: ~7/8 of physical per-core VMEM when
    # queryable, else a conservative 56 MiB that also fits v7x's 64 MiB/TC.
    try:
        cap = int(pltpu.get_tpu_info().vmem_capacity_bytes)
        return max(32 << 20, min((cap * 7) // 8, 112 << 20))
    except Exception:
        return 56 << 20


def _choose_row_tile(n_rows, requested, per_row_bytes, resident_bytes, vmem_cap):
    n8 = _round_up(max(n_rows, 1), 8)
    # Row-tile cap from the VMEM left after (worst-case double-buffered)
    # weight/bias residency plus a safety margin.
    budget = vmem_cap - resident_bytes - (4 << 20)
    cap = max(8, (budget // max(per_row_bytes, 1)) // 8 * 8)
    tile = max(8, min(_round_up(requested, 8), cap, n8))
    # >=2 grid steps so the "parallel" axis can feed both v7x TensorCores.
    if n8 // tile < 2 and n8 >= 16:
        tile = max(8, _round_up(n8 // 2, 8))
    # Prefer an even number of grid steps (v7x shards the parallel axis over 2 TCs).
    steps = -(-n8 // tile)
    if steps > 1 and steps % 2 == 1:
        alt = max(8, _round_up(-(-n8 // (steps + 1)), 8))
        if -(-n8 // alt) % 2 == 0:
            tile = alt
    return tile


def _make_kernel(num_hidden_layers, real_d, has_hidden_stack, approximate_gelu):
    inv_d = 1.0 / float(real_d)

    def kernel(*refs):
        if has_hidden_stack:
            x_ref, ln_ref, w0_ref, wh_ref, wo_ref, bh_ref, bo_ref, out_ref = refs
        else:
            x_ref, ln_ref, w0_ref, wo_ref, bh_ref, bo_ref, out_ref = refs
            wh_ref = None

        x = x_ref[...].astype(jnp.float32)          # (tm, D_pad), padded lanes are 0

        # --- LayerNorm (PyTorch semantics: biased var, eps=1e-5), fused single pass.
        # Padded lanes are zero, so sums over the padded width equal sums over real D.
        ln = ln_ref[...]                            # (2, D_pad): [weight; bias]
        mu = jnp.sum(x, axis=-1, keepdims=True) * inv_d
        ex2 = jnp.sum(x * x, axis=-1, keepdims=True) * inv_d
        var = jnp.maximum(ex2 - mu * mu, 0.0)
        xn = (x - mu) * lax.rsqrt(var + 1e-5)
        xn = xn * ln[0:1, :] + ln[1:2, :]           # padded lanes stay exactly 0

        bh = bh_ref[...]                            # (L+1, H_pad) stacked f32 biases

        # --- Linear(D->H) + GELU: bf16 operands into the MXU, f32 accumulate.
        h = jnp.dot(xn.astype(jnp.bfloat16), w0_ref[...],
                    preferred_element_type=jnp.float32) + bh[0:1, :]
        h = _gelu(h, approximate_gelu)

        # --- hidden Linear(H->H) + GELU blocks
        for l in range(num_hidden_layers):
            h = jnp.dot(h.astype(jnp.bfloat16), wh_ref[l],
                        preferred_element_type=jnp.float32) + bh[l + 1:l + 2, :]
            h = _gelu(h, approximate_gelu)

        # --- output Linear(H->O)
        y = jnp.dot(h.astype(jnp.bfloat16), wo_ref[...],
                    preferred_element_type=jnp.float32) + bo_ref[...]
        out_ref[...] = y.astype(out_ref.dtype)

    return kernel


def pack_params(params, num_hidden_layers):
    """One-time padding / packing / bf16 cast of all parameters (outside the per-call path)."""
    D, H = params["w0"].shape
    O = params["w_out"].shape[1]
    L = num_hidden_layers
    D_pad, H_pad, O_pad = (_round_up(d, 128) for d in (D, H, O))

    def pad2(a, r, c):
        return jnp.pad(a, ((0, r - a.shape[0]), (0, c - a.shape[1])))

    def pad1(a, c):
        return jnp.pad(a, ((0, c - a.shape[0]),))

    packed = {
        "D": D, "H": H, "O": O, "L": L,
        "D_pad": D_pad, "H_pad": H_pad, "O_pad": O_pad,
        # LayerNorm affine packed as (2, D_pad) = [weight; bias]
        "ln": jnp.stack([pad1(params["ln_w"][0], D_pad),
                         pad1(params["ln_b"][0], D_pad)]).astype(jnp.float32),
        # matmul weights in bf16 (native MXU operand dtype, half the DMA/VMEM)
        "w0": pad2(params["w0"], D_pad, H_pad).astype(jnp.bfloat16),
        "wo": pad2(params["w_out"], H_pad, O_pad).astype(jnp.bfloat16),
        # stacked H-sized biases (first layer + hidden layers): (L+1, H_pad)
        "bh": jnp.stack([pad1(params["b0"][0], H_pad)]
                        + [pad1(params[f"b{l + 1}"][0], H_pad) for l in range(L)]
                        ).astype(jnp.float32),
        "bo": pad2(params["b_out"], 1, O_pad).astype(jnp.float32),
    }
    if L > 0:
        packed["wh"] = jnp.stack([pad2(params[f"w{l + 1}"], H_pad, H_pad)
                                  for l in range(L)]).astype(jnp.bfloat16)
    return packed


def ts_encoder_forward(task_emb, packed, *, row_tile=512, approximate_gelu=False):
    """task_emb: (B, T, D) float32.  Returns (B, T, O).  Inference forward only."""
    B, T, D = task_emb.shape
    assert D == packed["D"]
    N = B * T
    O, L = packed["O"], packed["L"]
    D_pad, H_pad, O_pad = packed["D_pad"], packed["H_pad"], packed["O_pad"]
    has_hidden = L > 0

    weight_bytes = 2 * (D_pad * H_pad + L * H_pad * H_pad + H_pad * O_pad)  # bf16
    misc_bytes = 4 * (2 * D_pad + (L + 1) * H_pad + O_pad)                  # f32
    vmem_cap = _vmem_cap_bytes()
    # per-row bytes: double-buffered x/out f32 tiles + f32/bf16 intermediates
    per_row_bytes = 8 * (D_pad + O_pad) + 24 * H_pad
    tm = _choose_row_tile(N, row_tile, per_row_bytes,
                          2 * (weight_bytes + misc_bytes), vmem_cap)
    N_pad = -(-N // tm) * tm

    x2d = task_emb.reshape(N, D)
    if N_pad != N or D_pad != D:      # skip the pad when shapes already align
        x2d = jnp.pad(x2d, ((0, N_pad - N), (0, D_pad - D)))

    inputs = [x2d, packed["ln"], packed["w0"]]
    if has_hidden:
        inputs.append(packed["wh"])
    inputs += [packed["wo"], packed["bh"], packed["bo"]]

    kernel = _make_kernel(L, D, has_hidden, approximate_gelu)
    grid = (N_pad // tm,)

    flops = 2 * N_pad * (D_pad * H_pad + L * H_pad * H_pad + H_pad * O_pad)
    transcendentals = N_pad * H_pad * (L + 1)
    bytes_accessed = N_pad * (D_pad + O_pad) * 4 + weight_bytes + misc_bytes
    cost = pl.CostEstimate(flops=int(flops), transcendentals=int(transcendentals),
                           bytes_accessed=int(bytes_accessed))

    def build(single_buffer_weights):
        const_kwargs = ({"pipeline_mode": pl.Buffered(1)}
                        if single_buffer_weights else {})

        def const_spec(shape):
            idx = (lambda i: (0, 0, 0)) if len(shape) == 3 else (lambda i: (0, 0))
            return pl.BlockSpec(shape, idx, **const_kwargs)

        in_specs = [pl.BlockSpec((tm, D_pad), lambda i: (i, 0)),
                    const_spec(packed["ln"].shape),
                    const_spec(packed["w0"].shape)]
        if has_hidden:
            in_specs.append(const_spec(packed["wh"].shape))
        in_specs += [const_spec(packed["wo"].shape),
                     const_spec(packed["bh"].shape),
                     const_spec(packed["bo"].shape)]
        out_specs = pl.BlockSpec((tm, O_pad), lambda i: (i, 0))

        wb = 1 if single_buffer_weights else 2
        need = (wb * (weight_bytes + misc_bytes)
                + 2 * tm * (D_pad + O_pad) * 4      # double-buffered x/out tiles
                + 6 * tm * H_pad * 4                # intermediates
                + (6 << 20))
        vmem_limit = int(min(max(need, 16 << 20), vmem_cap))

        return pl.pallas_call(
            kernel,
            out_shape=jax.ShapeDtypeStruct((N_pad, O_pad), task_emb.dtype),
            grid=grid,
            in_specs=in_specs,
            out_specs=out_specs,
            compiler_params=pltpu.CompilerParams(
                dimension_semantics=("parallel",),
                vmem_limit_bytes=vmem_limit),
            cost_estimate=cost,
        )

    try:
        out2d = build(True)(*inputs)
    except Exception:
        # pl.Buffered(1) unsupported on this jax/libtpu -> default double-buffering.
        out2d = build(False)(*inputs)

    if N_pad != N or O_pad != O:      # skip the slice when nothing was padded
        out2d = out2d[:N, :O]
    return out2d.reshape(B, T, O)


def init_params(key, input_size, hidden_size, output_size, num_hidden_layers):
    """Synthetic init mirroring TSEncoder._init_weights:
    Linear weights ~ N(0, 0.02), Linear biases = 0, LayerNorm weight = 1, bias = 0.
    Weights stored as (in, out), i.e. x @ W == x @ W_pt.T."""
    params = {}
    params["ln_w"] = jnp.ones((1, input_size), jnp.float32)
    params["ln_b"] = jnp.zeros((1, input_size), jnp.float32)

    keys = jax.random.split(key, num_hidden_layers + 2)
    params["w0"] = 0.02 * jax.random.normal(keys[0], (input_size, hidden_size), jnp.float32)
    params["b0"] = jnp.zeros((1, hidden_size), jnp.float32)
    for l in range(num_hidden_layers):
        params[f"w{l + 1}"] = 0.02 * jax.random.normal(
            keys[1 + l], (hidden_size, hidden_size), jnp.float32)
        params[f"b{l + 1}"] = jnp.zeros((1, hidden_size), jnp.float32)
    params["w_out"] = 0.02 * jax.random.normal(
        keys[-1], (hidden_size, output_size), jnp.float32)
    params["b_out"] = jnp.zeros((1, output_size), jnp.float32)
    return params


def _reference_forward(task_emb, params, num_hidden_layers, approximate=False):
    """Pure-JAX reference mirroring the kernel's numerics (bf16 matmul operands,
    f32 accumulation), with PyTorch LayerNorm / GELU semantics."""
    bf16 = lambda a: a.astype(jnp.bfloat16)
    x = task_emb
    mu = jnp.mean(x, axis=-1, keepdims=True)
    var = jnp.mean((x - mu) ** 2, axis=-1, keepdims=True)
    xn = (x - mu) / jnp.sqrt(var + 1e-5) * params["ln_w"][0] + params["ln_b"][0]
    h = jnp.dot(bf16(xn), bf16(params["w0"]),
                preferred_element_type=jnp.float32) + params["b0"][0]
    h = _gelu(h, approximate)
    for l in range(num_hidden_layers):
        h = jnp.dot(bf16(h), bf16(params[f"w{l + 1}"]),
                    preferred_element_type=jnp.float32) + params[f"b{l + 1}"][0]
        h = _gelu(h, approximate)
    return jnp.dot(bf16(h), bf16(params["w_out"]),
                   preferred_element_type=jnp.float32) + params["b_out"][0]


if __name__ == "__main__":
    B, T = 2, 8
    input_size, hidden_size, output_size = 32, 32, 32
    num_hidden_layers = 1

    key = jax.random.PRNGKey(0)
    k_x, k_p = jax.random.split(key)
    task_emb = jax.random.normal(k_x, (B, T, input_size), jnp.float32)
    params = init_params(k_p, input_size, hidden_size, output_size, num_hidden_layers)
    packed = pack_params(params, num_hidden_layers)   # one-time pad/pack/bf16 cast

    # exact-erf GELU path (torch.nn.GELU semantics)
    out = ts_encoder_forward(task_emb, packed)
    out = jax.block_until_ready(out)
    ref = _reference_forward(task_emb, params, num_hidden_layers, approximate=False)
    assert out.shape == (B, T, output_size)
    assert jnp.allclose(out, ref, atol=1e-3, rtol=1e-3), \
        float(jnp.max(jnp.abs(out - ref)))

    # tanh-GELU (EUP-routed) fast path, checked against a matching tanh reference
    out_a = jax.block_until_ready(
        ts_encoder_forward(task_emb, packed, approximate_gelu=True))
    ref_a = _reference_forward(task_emb, params, num_hidden_layers, approximate=True)
    assert jnp.allclose(out_a, ref_a, atol=1e-3, rtol=1e-3), \
        float(jnp.max(jnp.abs(out_a - ref_a)))

    print("KERNEL_OK")
</pallas_src>

<mosaic_0001>
module attributes {stable_mosaic.version = 11 : i64} {
  func.func @kernel(%arg0: i32, %arg1: memref<8x128xf32, #tpu.memory_space<vmem>>, %arg2: memref<2x128xf32, #tpu.memory_space<vmem>>, %arg3: memref<128x128xbf16, #tpu.memory_space<vmem>>, %arg4: memref<1x128x128xbf16, #tpu.memory_space<vmem>>, %arg5: memref<128x128xbf16, #tpu.memory_space<vmem>>, %arg6: memref<2x128xf32, #tpu.memory_space<vmem>>, %arg7: memref<1x128xf32, #tpu.memory_space<vmem>>, %arg8: memref<8x128xf32, #tpu.memory_space<vmem>>) attributes {dimension_semantics = [#tpu.dimension_semantics<parallel>], iteration_bounds = array<i64: 2>, scalar_prefetch = 0 : i64, scratch_operands = 0 : i64, tpu.core_type = #tpu.core_type<tc>, window_params = [{transform_indices = @transform_0, window_bounds = array<i64: 8, 128>}, {pipeline_mode = #tpu.pipeline_mode<synchronous>, transform_indices = @transform_1, window_bounds = array<i64: 2, 128>}, {pipeline_mode = #tpu.pipeline_mode<synchronous>, transform_indices = @transform_2, window_bounds = array<i64: 128, 128>}, {pipeline_mode = #tpu.pipeline_mode<synchronous>, transform_indices = @transform_3, window_bounds = array<i64: 1, 128, 128>}, {pipeline_mode = #tpu.pipeline_mode<synchronous>, transform_indices = @transform_4, window_bounds = array<i64: 128, 128>}, {pipeline_mode = #tpu.pipeline_mode<synchronous>, transform_indices = @transform_5, window_bounds = array<i64: 2, 128>}, {pipeline_mode = #tpu.pipeline_mode<synchronous>, transform_indices = @transform_6, window_bounds = array<i64: 1, 128>}, {transform_indices = @transform_7, window_bounds = array<i64: 8, 128>}]} {
    %c0 = arith.constant 0 : index
    %c0_0 = arith.constant 0 : index
    %0 = vector.load %arg1[%c0, %c0_0] : memref<8x128xf32, #tpu.memory_space<vmem>>, vector<8x128xf32>
    %c0_1 = arith.constant 0 : index
    %c0_2 = arith.constant 0 : index
    %1 = vector.load %arg2[%c0_1, %c0_2] : memref<2x128xf32, #tpu.memory_space<vmem>>, vector<2x128xf32>
    %cst = arith.constant dense<0.000000e+00> : vector<8xf32>
    %2 = vector.multi_reduction <add>, %0, %cst [1] : vector<8x128xf32> to vector<8xf32>
    %3 = vector.shape_cast %2 : vector<8xf32> to vector<8x1xf32>
    %cst_3 = arith.constant 3.125000e-02 : f32
    %4 = vector.broadcast %cst_3 : f32 to vector<8x1xf32>
    %5 = arith.mulf %3, %4 : vector<8x1xf32>
    %6 = arith.mulf %0, %0 : vector<8x128xf32>
    %cst_4 = arith.constant dense<0.000000e+00> : vector<8xf32>
    %7 = vector.multi_reduction <add>, %6, %cst_4 [1] : vector<8x128xf32> to vector<8xf32>
    %8 = vector.shape_cast %7 : vector<8xf32> to vector<8x1xf32>
    %cst_5 = arith.constant 3.125000e-02 : f32
    %9 = vector.broadcast %cst_5 : f32 to vector<8x1xf32>
    %10 = arith.mulf %8, %9 : vector<8x1xf32>
    %11 = arith.mulf %5, %5 : vector<8x1xf32>
    %12 = arith.subf %10, %11 : vector<8x1xf32>
    %cst_6 = arith.constant 0.000000e+00 : f32
    %13 = vector.broadcast %cst_6 : f32 to vector<8x1xf32>
    %14 = arith.maximumf %12, %13 : vector<8x1xf32>
    %15 = vector.broadcast %5 : vector<8x1xf32> to vector<8x128xf32>
    %16 = arith.subf %0, %15 : vector<8x128xf32>
    %cst_7 = arith.constant 9.99999974E-6 : f32
    %17 = vector.broadcast %cst_7 : f32 to vector<8x1xf32>
    %18 = arith.addf %14, %17 : vector<8x1xf32>
    %19 = math.rsqrt %18 : vector<8x1xf32>
    %20 = vector.broadcast %19 : vector<8x1xf32> to vector<8x128xf32>
    %21 = arith.mulf %16, %20 : vector<8x128xf32>
    %22 = vector.extract_strided_slice %1 {offsets = [0, 0], sizes = [1, 128], strides = [1, 1]} : vector<2x128xf32> to vector<1x128xf32>
    %23 = vector.broadcast %22 : vector<1x128xf32> to vector<8x128xf32>
    %24 = arith.mulf %21, %23 : vector<8x128xf32>
    %25 = vector.extract_strided_slice %1 {offsets = [1, 0], sizes = [1, 128], strides = [1, 1]} : vector<2x128xf32> to vector<1x128xf32>
    %26 = vector.broadcast %25 : vector<1x128xf32> to vector<8x128xf32>
    %27 = arith.addf %24, %26 : vector<8x128xf32>
    %c0_8 = arith.constant 0 : index
    %c0_9 = arith.constant 0 : index
    %28 = vector.load %arg6[%c0_8, %c0_9] : memref<2x128xf32, #tpu.memory_space<vmem>>, vector<2x128xf32>
    %29 = arith.truncf %27 : vector<8x128xf32> to vector<8x128xbf16>
    %c0_10 = arith.constant 0 : index
    %c0_11 = arith.constant 0 : index
    %30 = vector.load %arg3[%c0_10, %c0_11] : memref<128x128xbf16, #tpu.memory_space<vmem>>, vector<128x128xbf16>
    %cst_12 = arith.constant dense<0.000000e+00> : vector<8x128xf32>
    %31 = tpu.matmul %29, %30, %cst_12 {dimension_numbers = #tpu.dot_dimension_numbers<[1], [0], [0], [1], [0, 0, 1, 1], [], []>} : vector<8x128xbf16>, vector<128x128xbf16>, vector<8x128xf32> -> vector<8x128xf32>
    %32 = vector.extract_strided_slice %28 {offsets = [0, 0], sizes = [1, 128], strides = [1, 1]} : vector<2x128xf32> to vector<1x128xf32>
    %33 = vector.broadcast %32 : vector<1x128xf32> to vector<8x128xf32>
    %34 = arith.addf %31, %33 : vector<8x128xf32>
    %cst_13 = arith.constant 5.000000e-01 : f32
    %35 = vector.broadcast %cst_13 : f32 to vector<8x128xf32>
    %36 = arith.mulf %35, %34 : vector<8x128xf32>
    %cst_14 = arith.constant 0.707106769 : f32
    %37 = vector.broadcast %cst_14 : f32 to vector<8x128xf32>
    %38 = arith.mulf %34, %37 : vector<8x128xf32>
    %39 = math.erf %38 : vector<8x128xf32>
    %cst_15 = arith.constant 1.000000e+00 : f32
    %40 = vector.broadcast %cst_15 : f32 to vector<8x128xf32>
    %41 = arith.addf %40, %39 : vector<8x128xf32>
    %42 = arith.mulf %36, %41 : vector<8x128xf32>
    %43 = arith.truncf %42 : vector<8x128xf32> to vector<8x128xbf16>
    %c0_16 = arith.constant 0 : index
    %c0_17 = arith.constant 0 : index
    %c0_18 = arith.constant 0 : index
    %44 = vector.load %arg4[%c0_16, %c0_17, %c0_18] : memref<1x128x128xbf16, #tpu.memory_space<vmem>>, vector<1x128x128xbf16>
    %45 = vector.shape_cast %44 : vector<1x128x128xbf16> to vector<128x128xbf16>
    %cst_19 = arith.constant dense<0.000000e+00> : vector<8x128xf32>
    %46 = tpu.matmul %43, %45, %cst_19 {dimension_numbers = #tpu.dot_dimension_numbers<[1], [0], [0], [1], [0, 0, 1, 1], [], []>} : vector<8x128xbf16>, vector<128x128xbf16>, vector<8x128xf32> -> vector<8x128xf32>
    %47 = vector.extract_strided_slice %28 {offsets = [1, 0], sizes = [1, 128], strides = [1, 1]} : vector<2x128xf32> to vector<1x128xf32>
    %48 = vector.broadcast %47 : vector<1x128xf32> to vector<8x128xf32>
    %49 = arith.addf %46, %48 : vector<8x128xf32>
    %cst_20 = arith.constant 5.000000e-01 : f32
    %50 = vector.broadcast %cst_20 : f32 to vector<8x128xf32>
    %51 = arith.mulf %50, %49 : vector<8x128xf32>
    %cst_21 = arith.constant 0.707106769 : f32
    %52 = vector.broadcast %cst_21 : f32 to vector<8x128xf32>
    %53 = arith.mulf %49, %52 : vector<8x128xf32>
    %54 = math.erf %53 : vector<8x128xf32>
    %cst_22 = arith.constant 1.000000e+00 : f32
    %55 = vector.broadcast %cst_22 : f32 to vector<8x128xf32>
    %56 = arith.addf %55, %54 : vector<8x128xf32>
    %57 = arith.mulf %51, %56 : vector<8x128xf32>
    %58 = arith.truncf %57 : vector<8x128xf32> to vector<8x128xbf16>
    %c0_23 = arith.constant 0 : index
    %c0_24 = arith.constant 0 : index
    %59 = vector.load %arg5[%c0_23, %c0_24] : memref<128x128xbf16, #tpu.memory_space<vmem>>, vector<128x128xbf16>
    %cst_25 = arith.constant dense<0.000000e+00> : vector<8x128xf32>
    %60 = tpu.matmul %58, %59, %cst_25 {dimension_numbers = #tpu.dot_dimension_numbers<[1], [0], [0], [1], [0, 0, 1, 1], [], []>} : vector<8x128xbf16>, vector<128x128xbf16>, vector<8x128xf32> -> vector<8x128xf32>
    %c0_26 = arith.constant 0 : index
    %c0_27 = arith.constant 0 : index
    %61 = vector.load %arg7[%c0_26, %c0_27] : memref<1x128xf32, #tpu.memory_space<vmem>>, vector<1x128xf32>
    %62 = vector.broadcast %61 : vector<1x128xf32> to vector<8x128xf32>
    %63 = arith.addf %60, %62 : vector<8x128xf32>
    %c0_28 = arith.constant 0 : index
    %c0_29 = arith.constant 0 : index
    %64 = vector.load %arg8[%c0_28, %c0_29] : memref<8x128xf32, #tpu.memory_space<vmem>>, vector<8x128xf32>
    tpu.vector_store %arg8[%c0_28, %c0_29], %63 {strides = array<i32>} : memref<8x128xf32, #tpu.memory_space<vmem>>, vector<8x128xf32>,
    return
  }
  func.func @transform_0(%arg0: i32) -> (i32, i32) {
    %c0_i32 = arith.constant 0 : i32
    %c0_i32_0 = arith.constant 0 : i32
    return %arg0, %c0_i32 : i32, i32
  }
  func.func @transform_1(%arg0: i32) -> (i32, i32) {
    %c0_i32 = arith.constant 0 : i32
    %c0_i32_0 = arith.constant 0 : i32
    %c0_i32_1 = arith.constant 0 : i32
    return %c0_i32, %c0_i32_0 : i32, i32
  }
  func.func @transform_2(%arg0: i32) -> (i32, i32) {
    %c0_i32 = arith.constant 0 : i32
    %c0_i32_0 = arith.constant 0 : i32
    %c0_i32_1 = arith.constant 0 : i32
    return %c0_i32, %c0_i32_0 : i32, i32
  }
  func.func @transform_3(%arg0: i32) -> (i32, i32, i32) {
    %c0_i32 = arith.constant 0 : i32
    %c0_i32_0 = arith.constant 0 : i32
    %c0_i32_1 = arith.constant 0 : i32
    %c0_i32_2 = arith.constant 0 : i32
    return %c0_i32, %c0_i32_0, %c0_i32_1 : i32, i32, i32
  }
  func.func @transform_4(%arg0: i32) -> (i32, i32) {
    %c0_i32 = arith.constant 0 : i32
    %c0_i32_0 = arith.constant 0 : i32
    %c0_i32_1 = arith.constant 0 : i32
    return %c0_i32, %c0_i32_0 : i32, i32
  }
  func.func @transform_5(%arg0: i32) -> (i32, i32) {
    %c0_i32 = arith.constant 0 : i32
    %c0_i32_0 = arith.constant 0 : i32
    %c0_i32_1 = arith.constant 0 : i32
    return %c0_i32, %c0_i32_0 : i32, i32
  }
  func.func @transform_6(%arg0: i32) -> (i32, i32) {
    %c0_i32 = arith.constant 0 : i32
    %c0_i32_0 = arith.constant 0 : i32
    %c0_i32_1 = arith.constant 0 : i32
    return %c0_i32, %c0_i32_0 : i32, i32
  }
  func.func @transform_7(%arg0: i32) -> (i32, i32) {
    %c0_i32 = arith.constant 0 : i32
    %c0_i32_0 = arith.constant 0 : i32
    return %arg0, %c0_i32 : i32, i32
  }
}

module attributes {stable_mosaic.version = 11 : i64} {
  func.func @kernel(%arg0: i32, %arg1: memref<8x128xf32, #tpu.memory_space<vmem>>, %arg2: memref<2x128xf32, #tpu.memory_space<vmem>>, %arg3: memref<128x128xbf16, #tpu.memory_space<vmem>>, %arg4: memref<1x128x128xbf16, #tpu.memory_space<vmem>>, %arg5: memref<128x128xbf16, #tpu.memory_space<vmem>>, %arg6: memref<2x128xf32, #tpu.memory_space<vmem>>, %arg7: memref<1x128xf32, #tpu.memory_space<vmem>>, %arg8: memref<8x128xf32, #tpu.memory_space<vmem>>) attributes {dimension_semantics = [#tpu.dimension_semantics<parallel>], iteration_bounds = array<i64: 2>, scalar_prefetch = 0 : i64, scratch_operands = 0 : i64, tpu.core_type = #tpu.core_type<tc>, window_params = [{transform_indices = @transform_0, window_bounds = array<i64: 8, 128>}, {pipeline_mode = #tpu.pipeline_mode<synchronous>, transform_indices = @transform_1, window_bounds = array<i64: 2, 128>}, {pipeline_mode = #tpu.pipeline_mode<synchronous>, transform_indices = @transform_2, window_bounds = array<i64: 128, 128>}, {pipeline_mode = #tpu.pipeline_mode<synchronous>, transform_indices = @transform_3, window_bounds = array<i64: 1, 128, 128>}, {pipeline_mode = #tpu.pipeline_mode<synchronous>, transform_indices = @transform_4, window_bounds = array<i64: 128, 128>}, {pipeline_mode = #tpu.pipeline_mode<synchronous>, transform_indices = @transform_5, window_bounds = array<i64: 2, 128>}, {pipeline_mode = #tpu.pipeline_mode<synchronous>, transform_indices = @transform_6, window_bounds = array<i64: 1, 128>}, {transform_indices = @transform_7, window_bounds = array<i64: 8, 128>}]} {
    %c0 = arith.constant 0 : index
    %c0_0 = arith.constant 0 : index
    %0 = vector.load %arg1[%c0, %c0_0] : memref<8x128xf32, #tpu.memory_space<vmem>>, vector<8x128xf32>
    %c0_1 = arith.constant 0 : index
    %c0_2 = arith.constant 0 : index
    %1 = vector.load %arg2[%c0_1, %c0_2] : memref<2x128xf32, #tpu.memory_space<vmem>>, vector<2x128xf32>
    %cst = arith.constant dense<0.000000e+00> : vector<8xf32>
    %2 = vector.multi_reduction <add>, %0, %cst [1] : vector<8x128xf32> to vector<8xf32>
    %3 = vector.shape_cast %2 : vector<8xf32> to vector<8x1xf32>
    %cst_3 = arith.constant 3.125000e-02 : f32
    %4 = vector.broadcast %cst_3 : f32 to vector<8x1xf32>
    %5 = arith.mulf %3, %4 : vector<8x1xf32>
    %6 = arith.mulf %0, %0 : vector<8x128xf32>
    %cst_4 = arith.constant dense<0.000000e+00> : vector<8xf32>
    %7 = vector.multi_reduction <add>, %6, %cst_4 [1] : vector<8x128xf32> to vector<8xf32>
    %8 = vector.shape_cast %7 : vector<8xf32> to vector<8x1xf32>
    %cst_5 = arith.constant 3.125000e-02 : f32
    %9 = vector.broadcast %cst_5 : f32 to vector<8x1xf32>
    %10 = arith.mulf %8, %9 : vector<8x1xf32>
    %11 = arith.mulf %5, %5 : vector<8x1xf32>
    %12 = arith.subf %10, %11 : vector<8x1xf32>
    %cst_6 = arith.constant 0.000000e+00 : f32
    %13 = vector.broadcast %cst_6 : f32 to vector<8x1xf32>
    %14 = arith.maximumf %12, %13 : vector<8x1xf32>
    %15 = vector.broadcast %5 : vector<8x1xf32> to vector<8x128xf32>
    %16 = arith.subf %0, %15 : vector<8x128xf32>
    %cst_7 = arith.constant 9.99999974E-6 : f32
    %17 = vector.broadcast %cst_7 : f32 to vector<8x1xf32>
    %18 = arith.addf %14, %17 : vector<8x1xf32>
    %19 = math.rsqrt %18 : vector<8x1xf32>
    %20 = vector.broadcast %19 : vector<8x1xf32> to vector<8x128xf32>
    %21 = arith.mulf %16, %20 : vector<8x128xf32>
    %22 = vector.extract_strided_slice %1 {offsets = [0, 0], sizes = [1, 128], strides = [1, 1]} : vector<2x128xf32> to vector<1x128xf32>
    %23 = vector.broadcast %22 : vector<1x128xf32> to vector<8x128xf32>
    %24 = arith.mulf %21, %23 : vector<8x128xf32>
    %25 = vector.extract_strided_slice %1 {offsets = [1, 0], sizes = [1, 128], strides = [1, 1]} : vector<2x128xf32> to vector<1x128xf32>
    %26 = vector.broadcast %25 : vector<1x128xf32> to vector<8x128xf32>
    %27 = arith.addf %24, %26 : vector<8x128xf32>
    %c0_8 = arith.constant 0 : index
    %c0_9 = arith.constant 0 : index
    %28 = vector.load %arg6[%c0_8, %c0_9] : memref<2x128xf32, #tpu.memory_space<vmem>>, vector<2x128xf32>
    %29 = arith.truncf %27 : vector<8x128xf32> to vector<8x128xbf16>
    %c0_10 = arith.constant 0 : index
    %c0_11 = arith.constant 0 : index
    %30 = vector.load %arg3[%c0_10, %c0_11] : memref<128x128xbf16, #tpu.memory_space<vmem>>, vector<128x128xbf16>
    %cst_12 = arith.constant dense<0.000000e+00> : vector<8x128xf32>
    %31 = tpu.matmul %29, %30, %cst_12 {dimension_numbers = #tpu.dot_dimension_numbers<[1], [0], [0], [1], [0, 0, 1, 1], [], []>} : vector<8x128xbf16>, vector<128x128xbf16>, vector<8x128xf32> -> vector<8x128xf32>
    %32 = vector.extract_strided_slice %28 {offsets = [0, 0], sizes = [1, 128], strides = [1, 1]} : vector<2x128xf32> to vector<1x128xf32>
    %33 = vector.broadcast %32 : vector<1x128xf32> to vector<8x128xf32>
    %34 = arith.addf %31, %33 : vector<8x128xf32>
    %cst_13 = arith.constant 5.000000e-01 : f32
    %35 = vector.broadcast %cst_13 : f32 to vector<8x128xf32>
    %36 = arith.mulf %35, %34 : vector<8x128xf32>
    %cst_14 = arith.constant 0.707106769 : f32
    %37 = vector.broadcast %cst_14 : f32 to vector<8x128xf32>
    %38 = arith.mulf %34, %37 : vector<8x128xf32>
    %39 = math.erf %38 : vector<8x128xf32>
    %cst_15 = arith.constant 1.000000e+00 : f32
    %40 = vector.broadcast %cst_15 : f32 to vector<8x128xf32>
    %41 = arith.addf %40, %39 : vector<8x128xf32>
    %42 = arith.mulf %36, %41 : vector<8x128xf32>
    %43 = arith.truncf %42 : vector<8x128xf32> to vector<8x128xbf16>
    %c0_16 = arith.constant 0 : index
    %c0_17 = arith.constant 0 : index
    %c0_18 = arith.constant 0 : index
    %44 = vector.load %arg4[%c0_16, %c0_17, %c0_18] : memref<1x128x128xbf16, #tpu.memory_space<vmem>>, vector<1x128x128xbf16>
    %45 = vector.shape_cast %44 : vector<1x128x128xbf16> to vector<128x128xbf16>
    %cst_19 = arith.constant dense<0.000000e+00> : vector<8x128xf32>
    %46 = tpu.matmul %43, %45, %cst_19 {dimension_numbers = #tpu.dot_dimension_numbers<[1], [0], [0], [1], [0, 0, 1, 1], [], []>} : vector<8x128xbf16>, vector<128x128xbf16>, vector<8x128xf32> -> vector<8x128xf32>
    %47 = vector.extract_strided_slice %28 {offsets = [1, 0], sizes = [1, 128], strides = [1, 1]} : vector<2x128xf32> to vector<1x128xf32>
    %48 = vector.broadcast %47 : vector<1x128xf32> to vector<8x128xf32>
    %49 = arith.addf %46, %48 : vector<8x128xf32>
    %cst_20 = arith.constant 5.000000e-01 : f32
    %50 = vector.broadcast %cst_20 : f32 to vector<8x128xf32>
    %51 = arith.mulf %50, %49 : vector<8x128xf32>
    %cst_21 = arith.constant 0.707106769 : f32
    %52 = vector.broadcast %cst_21 : f32 to vector<8x128xf32>
    %53 = arith.mulf %49, %52 : vector<8x128xf32>
    %54 = math.erf %53 : vector<8x128xf32>
    %cst_22 = arith.constant 1.000000e+00 : f32
    %55 = vector.broadcast %cst_22 : f32 to vector<8x128xf32>
    %56 = arith.addf %55, %54 : vector<8x128xf32>
    %57 = arith.mulf %51, %56 : vector<8x128xf32>
    %58 = arith.truncf %57 : vector<8x128xf32> to vector<8x128xbf16>
    %c0_23 = arith.constant 0 : index
    %c0_24 = arith.constant 0 : index
    %59 = vector.load %arg5[%c0_23, %c0_24] : memref<128x128xbf16, #tpu.memory_space<vmem>>, vector<128x128xbf16>
    %cst_25 = arith.constant dense<0.000000e+00> : vector<8x128xf32>
    %60 = tpu.matmul %58, %59, %cst_25 {dimension_numbers = #tpu.dot_dimension_numbers<[1], [0], [0], [1], [0, 0, 1, 1], [], []>} : vector<8x128xbf16>, vector<128x128xbf16>, vector<8x128xf32> -> vector<8x128xf32>
    %c0_26 = arith.constant 0 : index
    %c0_27 = arith.constant 0 : index
    %61 = vector.load %arg7[%c0_26, %c0_27] : memref<1x128xf32, #tpu.memory_space<vmem>>, vector<1x128xf32>
    %62 = vector.broadcast %61 : vector<1x128xf32> to vector<8x128xf32>
    %63 = arith.addf %60, %62 : vector<8x128xf32>
    %c0_28 = arith.constant 0 : index
    %c0_29 = arith.constant 0 : index
    %64 = vector.load %arg8[%c0_28, %c0_29] : memref<8x128xf32, #tpu.memory_space<vmem>>, vector<8x128xf32>
    tpu.vector_store %arg8[%c0_28, %c0_29], %63 {strides = array<i32>} : memref<8x128xf32, #tpu.memory_space<vmem>>, vector<8x128xf32>,
    return
  }
  func.func @transform_0(%arg0: i32) -> (i32, i32) {
    %c0_i32 = arith.constant 0 : i32
    %c0_i32_0 = arith.constant 0 : i32
    return %arg0, %c0_i32 : i32, i32
  }
  func.func @transform_1(%arg0: i32) -> (i32, i32) {
    %c0_i32 = arith.constant 0 : i32
    %c0_i32_0 = arith.constant 0 : i32
    %c0_i32_1 = arith.constant 0 : i32
    return %c0_i32, %c0_i32_0 : i32, i32
  }
  func.func @transform_2(%arg0: i32) -> (i32, i32) {
    %c0_i32 = arith.constant 0 : i32
    %c0_i32_0 = arith.constant 0 : i32
    %c0_i32_1 = arith.constant 0 : i32
    return %c0_i32, %c0_i32_0 : i32, i32
  }
  func.func @transform_3(%arg0: i32) -> (i32, i32, i32) {
    %c0_i32 = arith.constant 0 : i32
    %c0_i32_0 = arith.constant 0 : i32
    %c0_i32_1 = arith.constant 0 : i32
    %c0_i32_2 = arith.constant 0 : i32
    return %c0_i32, %c0_i32_0, %c0_i32_1 : i32, i32, i32
  }
  func.func @transform_4(%arg0: i32) -> (i32, i32) {
    %c0_i32 = arith.constant 0 : i32
    %c0_i32_0 = arith.constant 0 : i32
    %c0_i32_1 = arith.constant 0 : i32
    return %c0_i32, %c0_i32_0 : i32, i32
  }
  func.func @transform_5(%arg0: i32) -> (i32, i32) {
    %c0_i32 = arith.constant 0 : i32
    %c0_i32_0 = arith.constant 0 : i32
    %c0_i32_1 = arith.constant 0 : i32
    return %c0_i32, %c0_i32_0 : i32, i32
  }
  func.func @transform_6(%arg0: i32) -> (i32, i32) {
    %c0_i32 = arith.constant 0 : i32
    %c0_i32_0 = arith.constant 0 : i32
    %c0_i32_1 = arith.constant 0 : i32
    return %c0_i32, %c0_i32_0 : i32, i32
  }
  func.func @transform_7(%arg0: i32) -> (i32, i32) {
    %c0_i32 = arith.constant 0 : i32
    %c0_i32_0 = arith.constant 0 : i32
    return %arg0, %c0_i32 : i32, i32
  }
}

</mosaic_0001>

<bundles_post_ra>
// kernel: tpu_custom_call.1
= control target key start
LH: loop header
LB: loop body
LE: loop exit
PB: predicated region body
PF: predicated region fallthrough
CT: control target
= control target key end

     0   :  { %12 = vsyncpa [#allocation3], 0  ;;  %s1614_s0 = inlined_call_operand.hbm [shape: f32[16,128], index: 0, kind: input, shape index: {}]   ;;  %s1615_s1 = inlined_call_operand.vmem [shape: f32[2,128], index: 1, kind: input, shape index: {}]   ;;  %s1616_s2 = inlined_call_operand.hbm [shape: bf16[128,128], index: 2, kind: input, shape index: {}]   ;;  %s1617_s3 = inlined_call_operand.hbm [shape: bf16[1,128,128], index: 3, kind: input, shape index: {}]   ;;  %s1618_s4 = inlined_call_operand.hbm [shape: bf16[128,128], index: 4, kind: input, shape index: {}]   ;;  %s1619_s5 = inlined_call_operand.vmem [shape: f32[2,128], index: 5, kind: input, shape index: {}]   ;;  %s1620_s6 = inlined_call_operand.vmem [shape: f32[1,128], index: 6, kind: input, shape index: {}]   ;;  %s1621_s7 = inlined_call_operand.hbm [shape: f32[16,128], index: 7, kind: output, shape index: {}]  }
   0x1   :  { %14 = vsyncpa [#allocation3 + $0x1], 0 }
   0x2   :  { %15 = vsyncpa [#allocation6], 0 }
   0x3   :  { %16 = vsyncpa [#allocation9], 0 }
   0x4   :  { %17 = vsyncpa [#allocation4], 0 }
   0x5   :  { %19 = vsyncpa [#allocation4 + $0x1], 0  ;;  %s1300_s24 = smov 0   ;;  %s1302_s25 = smov 0  }
   0x6   :  { %s1304_s26 = smov 0   ;;  %s1306_s27 = smov 0  }
   0x7 LB: > { %s1321_s28 = sadd.s32 4294967295, %s1249_s27   ;;  %s820_s29 = sadd.s32 4294967294, %s1249_s27   ;;  %s1249_s27 = sphi %s1306_s27, %s1647_s27   ;;  %s1245_s26 = sphi %s1304_s26, %s1646_s26   ;;  %s1241_s25 = sphi %s1302_s25, %s1645_s25   ;;  %s1237_s24 = sphi %s1300_s24, %s1644_s24  }
   0x8   : > { %p45_p0 = scmp.ne.s32.totalorder %s1241_s25, %s1237_s24  ;;  %p1622_p1 = scmp.eq.s32.totalorder %s1321_s28, 0 }
   0x9   : > { %p201_p3 = scmp.eq.s32.totalorder %s820_s29, 1  ;;  %p821_p5 = scmp.ge.s32.totalorder %s1249_s27, 1 }
   0xa   : > { %p1330_p4 = por %p1622_p1, %p45_p0  ;;  %p208_p7 = scmp.lt.s32.totalorder %s1249_s27, 3 }
   0xb   : > { %p1335_p6 = por %p201_p3, %p45_p0  ;;  %s1251_s10 = smov [#allocation5]  }
   0xc   : > { %s1626_s30 = scalar_select %p1330_p4, 1, 0 }
   0xd   : > { %s1627_s8 = scalar_select %p1335_p6, 1, 0 }
   0xe   : > { %p1340_p8 = pnand %p821_p5, %p208_p7  ;;  %s223_s11 = sshll.u32 %s1251_s10, 4  ;;  %s1344_s11 = int_to_ptr.vmem [resolvable:$true] %s223_s11 }
   0xf   : > { %1628 = sst [smem:[#allocation15_spill]] %s1627_s8  ;;  %s1252_s13 = smov [#allocation7]  }
  0x10   : > { %s1629_s9 = scalar_select %p1340_p8, 1, 0 }
  0x11   : > { %p966_p9 = pneg %p1340_p8  ;;  %s236_s14 = sshll.u32 %s1252_s13, 4  ;;  %s1355_s14 = int_to_ptr.vmem [resolvable:$true] %s236_s14 }
  0x12   : > { %s1253_s15 = smov [#allocation8]   ;;  %s1061_s19 = scalar_lea.hbm %s1616_s2, 1024 }
  0x13   : > { %p1351_p11 = pnand %p966_p9, %p1622_p1  ;;  %s1357_s16 = sshll.u32 %s1253_s15, 4  ;;  %s250_s16 = int_to_ptr.vmem [resolvable:$true] %s1357_s16 }
  0x14   : > { %p1062_p12 = scmp.ne.s32.totalorder %s1616_s2, %s1061_s19  ;;  %p1068_p5 = scmp.lt.u32.totalorder %s1061_s19, %s1616_s2 }
  0x15   : > { %p1367_p13 = pneg %p1351_p11 }
  0x17   : > { %p1064_p0 = pnand %p1367_p13, %p1062_p12 }
  0x19   : > { %p1065_p3 = pneg %p1064_p0 }
  0x1b   : > { %p1070_p7 = pnand %p1068_p5, %p1065_p3 }
  0x1d   : > { %1073 = shalt.err (!%p1070_p7)
}
  0x1e   : > { %s1074_s10 = scalar_lea.vmem %s1344_s11, 1024  ;;  %p1082_p2 = scmp.lt.s32.totalorder %s1344_s11, %s1344_s11 }
  0x1f   : > { %p1075_p9 = scmp.ne.s32.totalorder %s1344_s11, %s1074_s10  ;;  %p1083_p6 = scmp.lt.s32.totalorder %s1074_s10, %s1074_s10 }
  0x21   : > { %p1077_p10 = pnand %p1075_p9, %p1367_p13  ;;  %p1084_p12 = por %p1083_p6, %p1082_p2 }
  0x23   : > { %p1078_p1 = pneg %p1077_p10 }
  0x25   : > { %p1085_p0 = pnand %p1084_p12, %p1078_p1 }
  0x27   : > { %1088 = shalt.err (!%p1085_p0)
}
  0x28   : > { %s1254_s13 = smov 64   ;;  %s1255_s15 = smov 4  }
  0x29   : > { %969 = dma.hbm_to_vmem [thread:$0]  (!%p1351_p11), %s1616_s2, 1024, %s1344_s11, [#allocation6], %s1254_s13, %s1254_s13, %s1255_s15  }
  0x2a   : > { %s1089_s21 = scalar_lea.hbm %s1617_s3, 1024 }
  0x2b   : > { %p1090_p1 = scmp.ne.s32.totalorder %s1617_s3, %s1089_s21  ;;  %p1096_p10 = scmp.lt.u32.totalorder %s1089_s21, %s1617_s3 }
  0x2d   : > { %p1092_p2 = pnand %p1090_p1, %p1367_p13 }
  0x2f   : > { %p1093_p6 = pneg %p1092_p2 }
  0x31   : > { %p1098_p3 = pnand %p1096_p10, %p1093_p6 }
  0x33   : > { %1101 = shalt.err (!%p1098_p3)
}
  0x34   : > { %s1102_s11 = scalar_lea.vmem %s1355_s14, 1024  ;;  %p1110_p12 = scmp.lt.s32.totalorder %s1355_s14, %s1355_s14 }
  0x35   : > { %p1103_p5 = scmp.ne.s32.totalorder %s1355_s14, %s1102_s11  ;;  %p1111_p0 = scmp.lt.s32.totalorder %s1102_s11, %s1102_s11 }
  0x37   : > { %p1105_p7 = pnand %p1103_p5, %p1367_p13  ;;  %p1112_p1 = por %p1111_p0, %p1110_p12 }
  0x39   : > { %p1106_p9 = pneg %p1105_p7 }
  0x3b   : > { %p1113_p2 = pnand %p1112_p1, %p1106_p9 }
  0x3d   : > { %1116 = shalt.err (!%p1113_p2)
}
  0x3e   : > { %972 = dma.hbm_to_vmem [thread:$0]  (!%p1351_p11), %s1617_s3, 1024, %s1355_s14, [#allocation6], %s1254_s13, %s1254_s13, %s1255_s15  }
  0x3f   : > { %s1117_s20 = scalar_lea.hbm %s1618_s4, 1024 }
  0x40   : > { %p1118_p6 = scmp.ne.s32.totalorder %s1618_s4, %s1117_s20  ;;  %p1124_p5 = scmp.lt.u32.totalorder %s1117_s20, %s1618_s4 }
  0x42   : > { %p1120_p10 = pnand %p1118_p6, %p1367_p13 }
  0x44   : > { %p1121_p3 = pneg %p1120_p10 }
  0x46   : > { %p1126_p7 = pnand %p1124_p5, %p1121_p3 }
  0x48   : > { %1129 = shalt.err (!%p1126_p7)
}
  0x49   : > { %s1130_s11 = scalar_lea.vmem %s250_s16, 1024  ;;  %p1138_p1 = scmp.lt.s32.totalorder %s250_s16, %s250_s16 }
  0x4a   : > { %p1131_p9 = scmp.ne.s32.totalorder %s250_s16, %s1130_s11  ;;  %p1139_p2 = scmp.lt.s32.totalorder %s1130_s11, %s1130_s11 }
  0x4c   : > { %p1133_p12 = pnand %p1131_p9, %p1367_p13  ;;  %p1140_p4 = por %p1139_p2, %p1138_p1 }
  0x4e   : > { %p1134_p0 = pneg %p1133_p12 }
  0x50   : > { %p1141_p8 = pnand %p1140_p4, %p1134_p0 }
  0x52   : > { %1144 = shalt.err (!%p1141_p8)
}
  0x53   : > { %975 = dma.hbm_to_vmem [thread:$0]  (!%p1351_p11), %s1618_s4, 1024, %s250_s16, [#allocation9], %s1254_s13, %s1254_s13, %s1255_s15  }
  0x54   : > { %s1440_s22 = sadd.s32 1, %s1249_s27   ;;  %s32_s17 = sadd.s32 1, %s1245_s26 }
  0x55   : > { %s29_s12 = ssub.s32 %s1249_s27, %s1440_s22  ;;  %p39_p8 = scmp.ne.s32.totalorder %s1245_s26, %s1241_s25 }
  0x56   : > { %p30_p4 = scmp.eq.s32.totalorder %s29_s12, 0  ;;  %p40_p13 = scmp.eq.s32.totalorder %s1249_s27, 0 }
  0x57   : > { %p987_p6 = scmp.lt.s32.totalorder %s1249_s27, 2  ;;  %p1632_p3 = scmp.eq.s32.totalorder %s1321_s28, 1 }
  0x58   : > { %s1450_s18 = scalar_select %p30_p4, %s1245_s26, %s32_s17  }
  0x59   : > { %p41_p10 = por %p40_p13, %p39_p8  ;;  %p1454_p5 = por %p1632_p3, %p39_p8 }
  0x5a   : > { %s269_s20 = sand.u32 1, %s1245_s26   ;;  %s827_s21 = sshll.u32 %s1249_s27, 7 }
  0x5b   : > { %s826_s16 = sshll.u32 %s269_s20, 3  ;;  %s1463_s23 = scalar_lea.hbm %s1614_s0, %s827_s21 }
  0x5c   : > { %s273_s29 = scalar_lea.vmem [#allocation2], %s826_s16  ;;  %p1465_p11 = pnand %p987_p6, %p41_p10 }
  0x5d   : > { %s280_s10 = sshll.u32 %s273_s29, 4  ;;  %s270_s14 = scalar_lea.sflag [#allocation3], %s269_s20  ;;  %s1469_s10 = int_to_ptr.vmem [resolvable:$true] %s280_s10 }
  0x5e   : > { %s1145_s8 = scalar_lea.hbm %s1463_s23, 128  ;;  %p1147_p9 = pneg %p1465_p11 }
  0x5f   : > { %p1146_p7 = scmp.ne.s32.totalorder %s1463_s23, %s1145_s8  ;;  %s1150_s21 = scalar_lea.hbm %s1614_s0, 256 }
  0x60   : > { %p1151_p1 = scmp.lt.u32.totalorder %s1463_s23, %s1614_s0  ;;  %p1152_p2 = scmp.lt.u32.totalorder %s1150_s21, %s1145_s8 }
  0x61   : > { %p1148_p12 = pnand %p1147_p9, %p1146_p7  ;;  %p1154_p8 = scmp.lt.u32.totalorder %s1145_s8, %s1463_s23 }
  0x62   : > { %p1153_p4 = por %p1152_p2, %p1151_p1 }
  0x63   : > { %p1149_p0 = pneg %p1148_p12 }
  0x64   : > { %p1155_p13 = por %p1154_p8, %p1153_p4 }
  0x66   : > { %p1156_p6 = pnand %p1155_p13, %p1149_p0 }
  0x68   : > { %1159 = shalt.err (!%p1156_p6)
}
  0x69   : > { %s1160_s20 = scalar_lea.vmem %s1469_s10, 128  ;;  %s1256_s15 = smov [#allocation2]  }
  0x6a   : > { %p1161_p10 = scmp.ne.s32.totalorder %s1469_s10, %s1160_s20  ;;  %s1165_s29 = sshll.u32 %s1256_s15, 4  ;;  %s1166_s29 = int_to_ptr.vmem [resolvable:$false] %s1165_s29 }
  0x6b   : > { %s1167_s12 = scalar_lea.vmem %s1166_s29, 256  ;;  %p1168_p12 = scmp.lt.s32.totalorder %s1469_s10, %s1166_s29 }
  0x6c   : > { %p1163_p3 = pnand %p1161_p10, %p1147_p9  ;;  %p1169_p1 = scmp.lt.s32.totalorder %s1167_s12, %s1160_s20 }
  0x6e   : > { %p1164_p7 = pneg %p1163_p3  ;;  %p1170_p2 = por %p1169_p1, %p1168_p12 }
  0x70   : > { %p1171_p4 = pnand %p1170_p2, %p1164_p7 }
  0x72   : > { %1174 = shalt.err (!%p1171_p4)
}
  0x73   : > { %979 = dma.hbm_to_vmem [thread:$0]  (!%p1465_p11), %s1463_s23, 128, %s1469_s10, %s270_s14  }
  0x74   : > { %p1635_p0 = scmp.ne.s32.totalorder %s1629_s9, 0 }
  0x75   : > { %s1499_s8 = sand.u32 (!%p1635_p0), 1, %s1241_s25   ;;  %p1636_p9 = scmp.ne.s32.totalorder (!%p1635_p0), %s1626_s30, 0 }
  0x76   : > { %289 = sbr.rel (%p1635_p0) target bundleno = 1002 (0x3ea), region = 48  ;;  %s829_s17 = sshll.u32 (!%p1635_p0), %s1499_s8, 3 }
  0x77   : > { %s292_s21 = scalar_lea.sflag (!%p1635_p0), [#allocation3], %s1499_s8  ;;  %s295_s16 = scalar_lea.vmem (!%p1635_p0), [#allocation2], %s829_s17 }
  0x7d   : > { %1220 = dma.done.wait (%p1636_p9), %s292_s21, 128  }
  0x7e   : > { %1222 = vsyncadd (%p1636_p9), %s292_s21, 4294967168  ;;  %p1637_p11 = scmp.eq.s32.totalorder %s1321_s28, 0 }
  0x80   : > { %1224 = dma.done.wait (%p1637_p11), [#allocation6], 2048   ;;  %p1638_p8 = pmov %p1637_p11 }
  0x82   : > { %1226 = vsyncadd (%p1638_p8), [#allocation6], 4294965248  ;;  %p1639_p13 = pmov %p1638_p8 }
  0x83   : > { %p1640_p6 = pmov %p1638_p8 }
  0x84   : > { %1228 = dma.done.wait (%p1639_p13), [#allocation9], 1024  }
  0x85   : > { %1230 = vsyncadd (%p1640_p6), [#allocation9], 4294966272  ;;  %v1257_v0 = vmov 0.0   ;;  %v339_v1 = vld [vmem:[%s295_s16] sm:$0xff]  ;;  %v1031_v3 = vld [vmem:[#allocation5] sm:$0xff]   ;;  %vm1258_vm0 = vmmov 0   ;;  %v355_v21 = vlaneseq }
  0x86   : > { %890 = vmatprep.subr.bf16.mxu0 %v1257_v0  ;;  %910 = vmatprep.subr.bf16.mxu1 %v1257_v0  ;;  %v344_v2 = vmul.f32 %v339_v1, %v339_v1  ;;  %v1032_v4 = vld [vmem:[#allocation5 + $0x8] sm:$0xff]   ;;  %v1033_v5 = vld [vmem:[#allocation5 + $0x10] sm:$0xff]   ;;  %v1034_v6 = vld [vmem:[#allocation5 + $0x18] sm:$0xff]   ;;  %s860_s13 = sshll.u32 %s1321_s28, 7  ;;  %s337_s20 = scalar_lea.vmem [#allocation10], %s829_s17 }
  0x87   : > { %341 = vadd.xlane.f32.xlu0 %v339_v1  ;;  %891 = vmatpush3.bf16.msra.mxu0 %v1031_v3  ;;  %v1035_v7 = vld [vmem:[#allocation5 + $0x20] sm:$0xff]   ;;  %v1036_v8 = vld [vmem:[#allocation5 + $0x28] sm:$0xff]   ;;  %v1037_v9 = vld [vmem:[#allocation5 + $0x30] sm:$0xff]   ;;  %v1534_v23 = vshrl.u32 %v355_v21, 7  ;;  %s721_s15 = sshll.u32 %s337_s20, 4  ;;  %s1570_s21 = scalar_lea.hbm %s1621_s7, %s860_s13  ;;  %s1572_s15 = int_to_ptr.vmem [resolvable:$true] %s721_s15 }
  0x88   : > { %892 = vmatprep.subr.bf16.mxu0 %v1257_v0  ;;  %906 = vmatprep.mubr.msk.bf16.mxu0 %vm1258_vm0, %v1257_v0  ;;  %v1038_v10 = vld [vmem:[#allocation5 + $0x38] sm:$0xff]   ;;  %v1039_v11 = vld [vmem:[#allocation7] sm:$0xff]   ;;  %v1040_v12 = vld [vmem:[#allocation7 + $0x8] sm:$0xff]   ;;  %s708_s28 = scalar_lea.sflag [#allocation4], %s1499_s8  ;;  %s1175_s16 = scalar_lea.vmem %s1572_s15, 128 }
  0x89   : > { %926 = vmatprep.mubr.msk.bf16.mxu1 %vm1258_vm0, %v1257_v0  ;;  %911 = vmatpush3.bf16.msra.mxu1 %v1039_v11  ;;  %v1041_v13 = vld [vmem:[#allocation7 + $0x10] sm:$0xff]   ;;  %v357_v24 = vsub.s32 0, %v1534_v23  ;;  %v362_v26 = vsub.s32 1, %v1534_v23  ;;  %v1042_v35 = vld [vmem:[#allocation7 + $0x18] sm:$0xff]   ;;  %v1043_v36 = vld [vmem:[#allocation7 + $0x20] sm:$0xff]   ;;  %p1176_p10 = scmp.ne.s32.totalorder %s1572_s15, %s1175_s16  ;;  %s1259_s17 = smov [#allocation10]  }
  0x8a   : > { %912 = vmatprep.subr.bf16.mxu1 %v1257_v0  ;;  %v340_v25 = vld [vmem:[%s1615_s1] sm:$0x3]  ;;  %v1044_v37 = vld [vmem:[#allocation7 + $0x28] sm:$0xff]   ;;  %v1046_v39 = vld [vmem:[#allocation7 + $0x38] sm:$0xff]   ;;  %s1179_s30 = sshll.u32 %s1259_s17, 4  ;;  %s1180_s30 = int_to_ptr.vmem [resolvable:$false] %s1179_s30 }
  0x8b   : > { %345 = vadd.xlane.f32.xlu0 %v344_v2  ;;  %893 = vmatpush3.bf16.msra.mxu0 %v1032_v4  ;;  %v358_v28 = vrot.slane %v340_v25, %v357_v24  ;;  %v363_v31 = vrot.slane %v340_v25, %v362_v26  ;;  %v1045_v38 = vld [vmem:[#allocation7 + $0x30] sm:$0xff]   ;;  %v1047_v40 = vld [vmem:[#allocation8] sm:$0xff]   ;;  %v1048_v41 = vld [vmem:[#allocation8 + $0x8] sm:$0xff]   ;;  %p1177_p3 = pnand %p1176_p10, %p1454_p5  ;;  %s1181_s9 = scalar_lea.vmem %s1180_s30, 256 }
  0x8c   : > { %894 = vmatprep.subr.bf16.mxu0 %v1257_v0  ;;  %v1049_v42 = vld [vmem:[#allocation8 + $0x10] sm:$0xff]   ;;  %v1050_v56 = vld [vmem:[#allocation8 + $0x18] sm:$0xff]   ;;  %v1051_v57 = vld [vmem:[#allocation8 + $0x20] sm:$0xff]   ;;  %p1182_p12 = scmp.lt.s32.totalorder %s1572_s15, %s1180_s30  ;;  %p1183_p1 = scmp.lt.s32.totalorder %s1181_s9, %s1175_s16 }
  0x8d   : > { %913 = vmatpush3.bf16.msra.mxu1 %v1040_v12  ;;  %v365_v43 = vld [vmem:[%s1619_s5] sm:$0x3]  ;;  %v1052_v58 = vld [vmem:[#allocation8 + $0x28] sm:$0xff]   ;;  %v1054_v60 = vld [vmem:[#allocation8 + $0x38] sm:$0xff]   ;;  %p1178_p7 = pneg %p1177_p3 }
  0x8e   : > { %914 = vmatprep.subr.bf16.mxu1 %v1257_v0  ;;  %v386_v44 = vrot.slane %v365_v43, %v357_v24  ;;  %v1053_v59 = vld [vmem:[#allocation8 + $0x30] sm:$0xff]   ;;  %v500_v61 = vrot.slane %v365_v43, %v362_v26  ;;  %p1184_p2 = por %p1183_p1, %p1182_p12 }
  0x8f   : > { %895 = vmatpush3.bf16.msra.mxu0 %v1033_v5 }
  0x90   : > { %896 = vmatprep.subr.bf16.mxu0 %v1257_v0  ;;  %p1185_p4 = pnand %p1184_p2, %p1178_p7 }
  0x91   : > { %915 = vmatpush3.bf16.msra.mxu1 %v1041_v13 }
  0x92   : > { %916 = vmatprep.subr.bf16.mxu1 %v1257_v0 }
  0x93   : > { %897 = vmatpush3.bf16.msra.mxu0 %v1034_v6 }
  0x94   : > { %898 = vmatprep.subr.bf16.mxu0 %v1257_v0 }
  0x95   : > { %917 = vmatpush3.bf16.msra.mxu1 %v1042_v35 }
  0x96   : > { %918 = vmatprep.subr.bf16.mxu1 %v1257_v0 }
  0x97   : > { %899 = vmatpush3.bf16.msra.mxu0 %v1035_v7 }
  0x98   : > { %900 = vmatprep.subr.bf16.mxu0 %v1257_v0 }
  0x99   : > { %919 = vmatpush3.bf16.msra.mxu1 %v1043_v36 }
  0x9a   : > { %920 = vmatprep.subr.bf16.mxu1 %v1257_v0 }
  0x9b   : > { %901 = vmatpush3.bf16.msra.mxu0 %v1036_v8 }
  0x9c   : > { %902 = vmatprep.subr.bf16.mxu0 %v1257_v0 }
  0x9d   : > { %921 = vmatpush3.bf16.msra.mxu1 %v1044_v37 }
  0x9e   : > { %922 = vmatprep.subr.bf16.mxu1 %v1257_v0 }
  0x9f   : > { %903 = vmatpush3.bf16.msra.mxu0 %v1037_v9  ;;  %v850_v9 = vld [vmem:[%s1620_s6] ss:$0 sm:$0xff] }
  0xa0   : > { %904 = vmatprep.subr.bf16.mxu0 %v1257_v0 }
  0xa1   : > { %923 = vmatpush3.bf16.msra.mxu1 %v1045_v38 }
  0xa2   : > { %924 = vmatprep.subr.bf16.mxu1 %v1257_v0 }
  0xa3   : > { %905 = vmatpush3.bf16.msra.mxu0 %v1038_v10 }
  0xa4   : > { %930 = vmatprep.subr.bf16.mxu0 %v1257_v0 }
  0xa5   : > { %925 = vmatpush3.bf16.msra.mxu1 %v1046_v39 }
 0x114   : > { %v342_v14 = vpop.xlane.xlu0 %341 }
 0x115   : > { %v343_v15 = vmul.f32 0.03125, %v342_v14 }
 0x117   : > { %v348_v17 = vmul.f32 %v343_v15, %v343_v15  ;;  %v351_v27 = vsub.f32 %v339_v1, %v343_v15 }
 0x118   : > { %v346_v16 = vpop.xlane.xlu0 %345 }
 0x119   : > { %v347_v18 = vmul.f32 0.03125, %v346_v16 }
 0x11b   : > { %v349_v19 = vsub.f32 %v347_v18, %v348_v17 }
 0x11d   : > { %v350_v20 = vmax.f32 %v349_v19, 0.0 }
 0x11f   : > { %v352_v22 = vadd.f32 1e-05, %v350_v20 }
 0x121   : > { %1055 = vrsqrt.f32 %v352_v22 }
 0x12b   : > { %v1056_v29 = vpop.eup %1055 }
 0x12c   : > { %v354_v30 = vmul.f32 %v1056_v29, %v351_v27 }
 0x12e   : > { %v359_v32 = vmul.f32 %v358_v28, %v354_v30 }
 0x130   : > { %v364_v33 = vadd.f32 %v363_v31, %v359_v32 }
 0x132   : > { %v366_v34 = vpack.c.bf16 %v364_v33, %v364_v33 }
 0x134   : > { %907 = vmatmul.mubr.bf16.vlgmr.msra.gmra.mrb[0].mxu0 %v366_v34 }
 0x135   : > { %946 = vmatprep.mubr.msk.bf16.mxu0 %vm1258_vm0, %v1257_v0  ;;  %931 = vmatpush3.bf16.msra.mxu0 %v1047_v40 }
 0x136   : > { %932 = vmatprep.subr.bf16.mxu0 %v1257_v0 }
 0x139   : > { %933 = vmatpush3.bf16.msra.mxu0 %v1048_v41 }
 0x13a   : > { %934 = vmatprep.subr.bf16.mxu0 %v1257_v0 }
 0x13d   : > { %935 = vmatpush3.bf16.msra.mxu0 %v1049_v42 }
 0x13e   : > { %936 = vmatprep.subr.bf16.mxu0 %v1257_v0 }
 0x141   : > { %937 = vmatpush3.bf16.msra.mxu0 %v1050_v56 }
 0x142   : > { %938 = vmatprep.subr.bf16.mxu0 %v1257_v0 }
 0x145   : > { %939 = vmatpush3.bf16.msra.mxu0 %v1051_v57 }
 0x146   : > { %940 = vmatprep.subr.bf16.mxu0 %v1257_v0 }
 0x149   : > { %941 = vmatpush3.bf16.msra.mxu0 %v1052_v58 }
 0x14a   : > { %942 = vmatprep.subr.bf16.mxu0 %v1257_v0 }
 0x14d   : > { %943 = vmatpush3.bf16.msra.mxu0 %v1053_v59 }
 0x14e   : > { %944 = vmatprep.subr.bf16.mxu0 %v1257_v0 }
 0x151   : > { %945 = vmatpush3.bf16.msra.mxu0 %v1054_v60 }
 0x207   : > { %v469_v45 = vpop.f32.mrb[0].mxu0 }
 0x208   : > { %v470_v46 = vadd.f32 %v469_v45, %v386_v44  ;;  %v908_v47 = vpop.f32.mrb[1].mxu0 }
 0x209   : > { %v472_v48 = vpop.f32.mrb[2].mxu0 }
 0x20a   : > { %v476_v49 = vmul.f32 0.70710677, %v470_v46  ;;  %v909_v50 = vpop.f32.mrb[3].mxu0  ;;  %v475_v52 = vmul.f32 0.5, %v470_v46 }
 0x20c   : > { %1057 = verf.f32 %v476_v49 }
 0x216   : > { %v1058_v51 = vpop.eup %1057 }
 0x217   : > { %v478_v53 = vadd.f32 1.0, %v1058_v51 }
 0x219   : > { %v479_v54 = vmul.f32 %v478_v53, %v475_v52 }
 0x21b   : > { %v480_v55 = vpack.c.bf16 %v479_v54, %v479_v54 }
 0x21d   : > { %927 = vmatmul.mubr.bf16.vlgmr.msra.gmra.mrb[0].mxu1 %v480_v55 }
 0x2f0   : > { %v583_v62 = vpop.f32.mrb[0].mxu1 }
 0x2f1   : > { %v584_v63 = vadd.f32 %v583_v62, %v500_v61  ;;  %v928_v1 = vpop.f32.mrb[1].mxu1 }
 0x2f2   : > { %v586_v2 = vpop.f32.mrb[2].mxu1 }
 0x2f3   : > { %v590_v3 = vmul.f32 0.70710677, %v584_v63  ;;  %v929_v4 = vpop.f32.mrb[3].mxu1  ;;  %v589_v6 = vmul.f32 0.5, %v584_v63 }
 0x2f5   : > { %1059 = verf.f32 %v590_v3 }
 0x2ff   : > { %v1060_v5 = vpop.eup %1059 }
 0x300   : > { %v592_v7 = vadd.f32 1.0, %v1060_v5 }
 0x302   : > { %v593_v8 = vmul.f32 %v592_v7, %v589_v6 }
 0x304   : > { %v594_v0 = vpack.c.bf16 %v593_v8, %v593_v8 }
 0x306   : > { %947 = vmatmul.mubr.bf16.vlgmr.msra.gmra.mrb[4].mxu0 %v594_v0 }
 0x3d9   : > { %v700_v10 = vpop.f32.mrb[4].mxu0 }
 0x3da   : > { %v701_v11 = vadd.f32 %v850_v9, %v700_v10  ;;  %v948_v12 = vpop.f32.mrb[5].mxu0 }
 0x3db   : > { %v703_v13 = vpop.f32.mrb[6].mxu0 }
 0x3dc   : > { %706 = vst [vmem:[%s337_s20] sm:$0xff] %v701_v11  ;;  %v949_v14 = vpop.f32.mrb[7].mxu0 }
 0x3dd   : > { %1188 = shalt.err (!%p1185_p4)
}
 0x3de   : > { %s1189_s8 = scalar_lea.hbm %s1570_s21, 128  ;;  %s1193_s11 = scalar_lea.hbm %s1621_s7, 256 }
 0x3df   : > { %p1190_p0 = scmp.ne.s32.totalorder %s1570_s21, %s1189_s8  ;;  %p1194_p8 = scmp.lt.u32.totalorder %s1570_s21, %s1621_s7 }
 0x3e0   : > { %p1195_p13 = scmp.lt.u32.totalorder %s1193_s11, %s1189_s8  ;;  %p1197_p10 = scmp.lt.u32.totalorder %s1189_s8, %s1570_s21 }
 0x3e1   : > { %p1191_p9 = pnand %p1190_p0, %p1454_p5 }
 0x3e2   : > { %p1196_p6 = por %p1195_p13, %p1194_p8 }
 0x3e3   : > { %p1192_p11 = pneg %p1191_p9 }
 0x3e4   : > { %p1198_p3 = por %p1197_p10, %p1196_p6 }
 0x3e6   : > { %p1199_p7 = pnand %p1198_p3, %p1192_p11 }
 0x3e8   : > { %1202 = shalt.err (!%p1199_p7)
}
 0x3e9   : > { %964 = dma.vmem_to_hbm [thread:$0]  (%p1454_p5), %s1572_s15, 128, %s1570_s21, %s708_s28  }
 0x3ea PF: > { %s1641_s20 = sld [smem:[#allocation15_spill]]  ;;  %s733_s29 = sand.u32 1, %s1237_s24  }
 0x3eb   : > { %p1643_p1 = scmp.ge.s32.totalorder %s1249_s27, 2  ;;  %s734_s12 = scalar_lea.sflag [#allocation4], %s733_s29 }
 0x3f0   : > { %p1642_p12 = scmp.ne.s32.totalorder %s1641_s20, 0 }
 0x3f2   : > { %p981_p2 = pnand %p1643_p1, %p1642_p12 }
 0x3f4   : > { %1232 = dma.done.wait (!%p981_p2), %s734_s12, 128  }
 0x3f5   : > { %1234 = vsyncadd (!%p981_p2), %s734_s12, 4294967168  ;;  %p22_p4 = scmp.ge.s32.totalorder %s1440_s22, 4   ;;  %s1644_s24 = smov %s1241_s25 }
 0x3f6   : > { %s1645_s25 = smov %s1245_s26  ;;  %s1646_s26 = smov %s1450_s18 }
 0x3f7   : > { %s1647_s27 = smov %s1440_s22  ;;  %24 = sbr.rel (!%p22_p4) target bundleno = 7 (0x7), region = 105 }
 0x3fe   :  { %739 = vsyncpa [#allocation3], 1 }
 0x3ff   :  { %741 = vsyncpa [#allocation3 + $0x1], 1 }
 0x400   :  { %742 = vsyncpa [#allocation6], 1 }
 0x401   :  { %743 = vsyncpa [#allocation9], 1 }
 0x402   :  { %744 = vsyncpa [#allocation4], 1 }
 0x403   :  { %746 = vsyncpa [#allocation4 + $0x1], 1 }

// kernel: tpu_custom_call.1
= control target key start
LH: loop header
LB: loop body
LE: loop exit
PB: predicated region body
PF: predicated region fallthrough
CT: control target
= control target key end

     0   :  { %12 = vsyncpa [#allocation3], 0  ;;  %s1614_s0 = inlined_call_operand.hbm [shape: f32[16,128], index: 0, kind: input, shape index: {}]   ;;  %s1615_s1 = inlined_call_operand.vmem [shape: f32[2,128], index: 1, kind: input, shape index: {}]   ;;  %s1616_s2 = inlined_call_operand.hbm [shape: bf16[128,128], index: 2, kind: input, shape index: {}]   ;;  %s1617_s3 = inlined_call_operand.hbm [shape: bf16[1,128,128], index: 3, kind: input, shape index: {}]   ;;  %s1618_s4 = inlined_call_operand.hbm [shape: bf16[128,128], index: 4, kind: input, shape index: {}]   ;;  %s1619_s5 = inlined_call_operand.vmem [shape: f32[2,128], index: 5, kind: input, shape index: {}]   ;;  %s1620_s6 = inlined_call_operand.vmem [shape: f32[1,128], index: 6, kind: input, shape index: {}]   ;;  %s1621_s7 = inlined_call_operand.hbm [shape: f32[16,128], index: 7, kind: output, shape index: {}]  }
   0x1   :  { %14 = vsyncpa [#allocation3 + $0x1], 0 }
   0x2   :  { %15 = vsyncpa [#allocation6], 0 }
   0x3   :  { %16 = vsyncpa [#allocation9], 0 }
   0x4   :  { %17 = vsyncpa [#allocation4], 0 }
   0x5   :  { %19 = vsyncpa [#allocation4 + $0x1], 0  ;;  %s1300_s24 = smov 0   ;;  %s1302_s25 = smov 0  }
   0x6   :  { %s1304_s26 = smov 0   ;;  %s1306_s27 = smov 0  }
   0x7 LB: > { %s1321_s28 = sadd.s32 4294967295, %s1249_s27   ;;  %s820_s29 = sadd.s32 4294967294, %s1249_s27   ;;  %s1249_s27 = sphi %s1306_s27, %s1647_s27   ;;  %s1245_s26 = sphi %s1304_s26, %s1646_s26   ;;  %s1241_s25 = sphi %s1302_s25, %s1645_s25   ;;  %s1237_s24 = sphi %s1300_s24, %s1644_s24  }
   0x8   : > { %p45_p0 = scmp.ne.s32.totalorder %s1241_s25, %s1237_s24  ;;  %p1622_p1 = scmp.eq.s32.totalorder %s1321_s28, 0 }
   0x9   : > { %p201_p3 = scmp.eq.s32.totalorder %s820_s29, 1  ;;  %p821_p5 = scmp.ge.s32.totalorder %s1249_s27, 1 }
   0xa   : > { %p1330_p4 = por %p1622_p1, %p45_p0  ;;  %p208_p7 = scmp.lt.s32.totalorder %s1249_s27, 3 }
   0xb   : > { %p1335_p6 = por %p201_p3, %p45_p0  ;;  %s1251_s10 = smov [#allocation5]  }
   0xc   : > { %s1626_s30 = scalar_select %p1330_p4, 1, 0 }
   0xd   : > { %s1627_s8 = scalar_select %p1335_p6, 1, 0 }
   0xe   : > { %p1340_p8 = pnand %p821_p5, %p208_p7  ;;  %s223_s11 = sshll.u32 %s1251_s10, 4  ;;  %s1344_s11 = int_to_ptr.vmem [resolvable:$true] %s223_s11 }
   0xf   : > { %1628 = sst [smem:[#allocation15_spill]] %s1627_s8  ;;  %s1252_s13 = smov [#allocation7]  }
  0x10   : > { %s1629_s9 = scalar_select %p1340_p8, 1, 0 }
  0x11   : > { %p966_p9 = pneg %p1340_p8  ;;  %s236_s14 = sshll.u32 %s1252_s13, 4  ;;  %s1355_s14 = int_to_ptr.vmem [resolvable:$true] %s236_s14 }
  0x12   : > { %s1253_s15 = smov [#allocation8]   ;;  %s1061_s19 = scalar_lea.hbm %s1616_s2, 1024 }
  0x13   : > { %p1351_p11 = pnand %p966_p9, %p1622_p1  ;;  %s1357_s16 = sshll.u32 %s1253_s15, 4  ;;  %s250_s16 = int_to_ptr.vmem [resolvable:$true] %s1357_s16 }
  0x14   : > { %p1062_p12 = scmp.ne.s32.totalorder %s1616_s2, %s1061_s19  ;;  %p1068_p5 = scmp.lt.u32.totalorder %s1061_s19, %s1616_s2 }
  0x15   : > { %p1367_p13 = pneg %p1351_p11 }
  0x17   : > { %p1064_p0 = pnand %p1367_p13, %p1062_p12 }
  0x19   : > { %p1065_p3 = pneg %p1064_p0 }
  0x1b   : > { %p1070_p7 = pnand %p1068_p5, %p1065_p3 }
  0x1d   : > { %1073 = shalt.err (!%p1070_p7)
}
  0x1e   : > { %s1074_s10 = scalar_lea.vmem %s1344_s11, 1024  ;;  %p1082_p2 = scmp.lt.s32.totalorder %s1344_s11, %s1344_s11 }
  0x1f   : > { %p1075_p9 = scmp.ne.s32.totalorder %s1344_s11, %s1074_s10  ;;  %p1083_p6 = scmp.lt.s32.totalorder %s1074_s10, %s1074_s10 }
  0x21   : > { %p1077_p10 = pnand %p1075_p9, %p1367_p13  ;;  %p1084_p12 = por %p1083_p6, %p1082_p2 }
  0x23   : > { %p1078_p1 = pneg %p1077_p10 }
  0x25   : > { %p1085_p0 = pnand %p1084_p12, %p1078_p1 }
  0x27   : > { %1088 = shalt.err (!%p1085_p0)
}
  0x28   : > { %s1254_s13 = smov 64   ;;  %s1255_s15 = smov 4  }
  0x29   : > { %969 = dma.hbm_to_vmem [thread:$0]  (!%p1351_p11), %s1616_s2, 1024, %s1344_s11, [#allocation6], %s1254_s13, %s1254_s13, %s1255_s15  }
  0x2a   : > { %s1089_s21 = scalar_lea.hbm %s1617_s3, 1024 }
  0x2b   : > { %p1090_p1 = scmp.ne.s32.totalorder %s1617_s3, %s1089_s21  ;;  %p1096_p10 = scmp.lt.u32.totalorder %s1089_s21, %s1617_s3 }
  0x2d   : > { %p1092_p2 = pnand %p1090_p1, %p1367_p13 }
  0x2f   : > { %p1093_p6 = pneg %p1092_p2 }
  0x31   : > { %p1098_p3 = pnand %p1096_p10, %p1093_p6 }
  0x33   : > { %1101 = shalt.err (!%p1098_p3)
}
  0x34   : > { %s1102_s11 = scalar_lea.vmem %s1355_s14, 1024  ;;  %p1110_p12 = scmp.lt.s32.totalorder %s1355_s14, %s1355_s14 }
  0x35   : > { %p1103_p5 = scmp.ne.s32.totalorder %s1355_s14, %s1102_s11  ;;  %p1111_p0 = scmp.lt.s32.totalorder %s1102_s11, %s1102_s11 }
  0x37   : > { %p1105_p7 = pnand %p1103_p5, %p1367_p13  ;;  %p1112_p1 = por %p1111_p0, %p1110_p12 }
  0x39   : > { %p1106_p9 = pneg %p1105_p7 }
  0x3b   : > { %p1113_p2 = pnand %p1112_p1, %p1106_p9 }
  0x3d   : > { %1116 = shalt.err (!%p1113_p2)
}
  0x3e   : > { %972 = dma.hbm_to_vmem [thread:$0]  (!%p1351_p11), %s1617_s3, 1024, %s1355_s14, [#allocation6], %s1254_s13, %s1254_s13, %s1255_s15  }
  0x3f   : > { %s1117_s20 = scalar_lea.hbm %s1618_s4, 1024 }
  0x40   : > { %p1118_p6 = scmp.ne.s32.totalorder %s1618_s4, %s1117_s20  ;;  %p1124_p5 = scmp.lt.u32.totalorder %s1117_s20, %s1618_s4 }
  0x42   : > { %p1120_p10 = pnand %p1118_p6, %p1367_p13 }
  0x44   : > { %p1121_p3 = pneg %p1120_p10 }
  0x46   : > { %p1126_p7 = pnand %p1124_p5, %p1121_p3 }
  0x48   : > { %1129 = shalt.err (!%p1126_p7)
}
  0x49   : > { %s1130_s11 = scalar_lea.vmem %s250_s16, 1024  ;;  %p1138_p1 = scmp.lt.s32.totalorder %s250_s16, %s250_s16 }
  0x4a   : > { %p1131_p9 = scmp.ne.s32.totalorder %s250_s16, %s1130_s11  ;;  %p1139_p2 = scmp.lt.s32.totalorder %s1130_s11, %s1130_s11 }
  0x4c   : > { %p1133_p12 = pnand %p1131_p9, %p1367_p13  ;;  %p1140_p4 = por %p1139_p2, %p1138_p1 }
  0x4e   : > { %p1134_p0 = pneg %p1133_p12 }
  0x50   : > { %p1141_p8 = pnand %p1140_p4, %p1134_p0 }
  0x52   : > { %1144 = shalt.err (!%p1141_p8)
}
  0x53   : > { %975 = dma.hbm_to_vmem [thread:$0]  (!%p1351_p11), %s1618_s4, 1024, %s250_s16, [#allocation9], %s1254_s13, %s1254_s13, %s1255_s15  }
  0x54   : > { %s1440_s22 = sadd.s32 1, %s1249_s27   ;;  %s32_s17 = sadd.s32 1, %s1245_s26 }
  0x55   : > { %s29_s12 = ssub.s32 %s1249_s27, %s1440_s22  ;;  %p39_p8 = scmp.ne.s32.totalorder %s1245_s26, %s1241_s25 }
  0x56   : > { %p30_p4 = scmp.eq.s32.totalorder %s29_s12, 0  ;;  %p40_p13 = scmp.eq.s32.totalorder %s1249_s27, 0 }
  0x57   : > { %p987_p6 = scmp.lt.s32.totalorder %s1249_s27, 2  ;;  %p1632_p3 = scmp.eq.s32.totalorder %s1321_s28, 1 }
  0x58   : > { %s1450_s18 = scalar_select %p30_p4, %s1245_s26, %s32_s17  }
  0x59   : > { %p41_p10 = por %p40_p13, %p39_p8  ;;  %p1454_p5 = por %p1632_p3, %p39_p8 }
  0x5a   : > { %s269_s20 = sand.u32 1, %s1245_s26   ;;  %s827_s21 = sshll.u32 %s1249_s27, 7 }
  0x5b   : > { %s826_s16 = sshll.u32 %s269_s20, 3  ;;  %s1463_s23 = scalar_lea.hbm %s1614_s0, %s827_s21 }
  0x5c   : > { %s273_s29 = scalar_lea.vmem [#allocation2], %s826_s16  ;;  %p1465_p11 = pnand %p987_p6, %p41_p10 }
  0x5d   : > { %s280_s10 = sshll.u32 %s273_s29, 4  ;;  %s270_s14 = scalar_lea.sflag [#allocation3], %s269_s20  ;;  %s1469_s10 = int_to_ptr.vmem [resolvable:$true] %s280_s10 }
  0x5e   : > { %s1145_s8 = scalar_lea.hbm %s1463_s23, 128  ;;  %p1147_p9 = pneg %p1465_p11 }
  0x5f   : > { %p1146_p7 = scmp.ne.s32.totalorder %s1463_s23, %s1145_s8  ;;  %s1150_s21 = scalar_lea.hbm %s1614_s0, 256 }
  0x60   : > { %p1151_p1 = scmp.lt.u32.totalorder %s1463_s23, %s1614_s0  ;;  %p1152_p2 = scmp.lt.u32.totalorder %s1150_s21, %s1145_s8 }
  0x61   : > { %p1148_p12 = pnand %p1147_p9, %p1146_p7  ;;  %p1154_p8 = scmp.lt.u32.totalorder %s1145_s8, %s1463_s23 }
  0x62   : > { %p1153_p4 = por %p1152_p2, %p1151_p1 }
  0x63   : > { %p1149_p0 = pneg %p1148_p12 }
  0x64   : > { %p1155_p13 = por %p1154_p8, %p1153_p4 }
  0x66   : > { %p1156_p6 = pnand %p1155_p13, %p1149_p0 }
  0x68   : > { %1159 = shalt.err (!%p1156_p6)
}
  0x69   : > { %s1160_s20 = scalar_lea.vmem %s1469_s10, 128  ;;  %s1256_s15 = smov [#allocation2]  }
  0x6a   : > { %p1161_p10 = scmp.ne.s32.totalorder %s1469_s10, %s1160_s20  ;;  %s1165_s29 = sshll.u32 %s1256_s15, 4  ;;  %s1166_s29 = int_to_ptr.vmem [resolvable:$false] %s1165_s29 }
  0x6b   : > { %s1167_s12 = scalar_lea.vmem %s1166_s29, 256  ;;  %p1168_p12 = scmp.lt.s32.totalorder %s1469_s10, %s1166_s29 }
  0x6c   : > { %p1163_p3 = pnand %p1161_p10, %p1147_p9  ;;  %p1169_p1 = scmp.lt.s32.totalorder %s1167_s12, %s1160_s20 }
  0x6e   : > { %p1164_p7 = pneg %p1163_p3  ;;  %p1170_p2 = por %p1169_p1, %p1168_p12 }
  0x70   : > { %p1171_p4 = pnand %p1170_p2, %p1164_p7 }
  0x72   : > { %1174 = shalt.err (!%p1171_p4)
}
  0x73   : > { %979 = dma.hbm_to_vmem [thread:$0]  (!%p1465_p11), %s1463_s23, 128, %s1469_s10, %s270_s14  }
  0x74   : > { %p1635_p0 = scmp.ne.s32.totalorder %s1629_s9, 0 }
  0x75   : > { %s1499_s8 = sand.u32 (!%p1635_p0), 1, %s1241_s25   ;;  %p1636_p9 = scmp.ne.s32.totalorder (!%p1635_p0), %s1626_s30, 0 }
  0x76   : > { %289 = sbr.rel (%p1635_p0) target bundleno = 1002 (0x3ea), region = 48  ;;  %s829_s17 = sshll.u32 (!%p1635_p0), %s1499_s8, 3 }
  0x77   : > { %s292_s21 = scalar_lea.sflag (!%p1635_p0), [#allocation3], %s1499_s8  ;;  %s295_s16 = scalar_lea.vmem (!%p1635_p0), [#allocation2], %s829_s17 }
  0x7d   : > { %1220 = dma.done.wait (%p1636_p9), %s292_s21, 128  }
  0x7e   : > { %1222 = vsyncadd (%p1636_p9), %s292_s21, 4294967168  ;;  %p1637_p11 = scmp.eq.s32.totalorder %s1321_s28, 0 }
  0x80   : > { %1224 = dma.done.wait (%p1637_p11), [#allocation6], 2048   ;;  %p1638_p8 = pmov %p1637_p11 }
  0x82   : > { %1226 = vsyncadd (%p1638_p8), [#allocation6], 4294965248  ;;  %p1639_p13 = pmov %p1638_p8 }
  0x83   : > { %p1640_p6 = pmov %p1638_p8 }
  0x84   : > { %1228 = dma.done.wait (%p1639_p13), [#allocation9], 1024  }
  0x85   : > { %1230 = vsyncadd (%p1640_p6), [#allocation9], 4294966272  ;;  %v1257_v0 = vmov 0.0   ;;  %v339_v1 = vld [vmem:[%s295_s16] sm:$0xff]  ;;  %v1031_v3 = vld [vmem:[#allocation5] sm:$0xff]   ;;  %vm1258_vm0 = vmmov 0   ;;  %v355_v21 = vlaneseq }
  0x86   : > { %890 = vmatprep.subr.bf16.mxu0 %v1257_v0  ;;  %910 = vmatprep.subr.bf16.mxu1 %v1257_v0  ;;  %v344_v2 = vmul.f32 %v339_v1, %v339_v1  ;;  %v1032_v4 = vld [vmem:[#allocation5 + $0x8] sm:$0xff]   ;;  %v1033_v5 = vld [vmem:[#allocation5 + $0x10] sm:$0xff]   ;;  %v1034_v6 = vld [vmem:[#allocation5 + $0x18] sm:$0xff]   ;;  %s860_s13 = sshll.u32 %s1321_s28, 7  ;;  %s337_s20 = scalar_lea.vmem [#allocation10], %s829_s17 }
  0x87   : > { %341 = vadd.xlane.f32.xlu0 %v339_v1  ;;  %891 = vmatpush3.bf16.msra.mxu0 %v1031_v3  ;;  %v1035_v7 = vld [vmem:[#allocation5 + $0x20] sm:$0xff]   ;;  %v1036_v8 = vld [vmem:[#allocation5 + $0x28] sm:$0xff]   ;;  %v1037_v9 = vld [vmem:[#allocation5 + $0x30] sm:$0xff]   ;;  %v1534_v23 = vshrl.u32 %v355_v21, 7  ;;  %s721_s15 = sshll.u32 %s337_s20, 4  ;;  %s1570_s21 = scalar_lea.hbm %s1621_s7, %s860_s13  ;;  %s1572_s15 = int_to_ptr.vmem [resolvable:$true] %s721_s15 }
  0x88   : > { %892 = vmatprep.subr.bf16.mxu0 %v1257_v0  ;;  %906 = vmatprep.mubr.msk.bf16.mxu0 %vm1258_vm0, %v1257_v0  ;;  %v1038_v10 = vld [vmem:[#allocation5 + $0x38] sm:$0xff]   ;;  %v1039_v11 = vld [vmem:[#allocation7] sm:$0xff]   ;;  %v1040_v12 = vld [vmem:[#allocation7 + $0x8] sm:$0xff]   ;;  %s708_s28 = scalar_lea.sflag [#allocation4], %s1499_s8  ;;  %s1175_s16 = scalar_lea.vmem %s1572_s15, 128 }
  0x89   : > { %926 = vmatprep.mubr.msk.bf16.mxu1 %vm1258_vm0, %v1257_v0  ;;  %911 = vmatpush3.bf16.msra.mxu1 %v1039_v11  ;;  %v1041_v13 = vld [vmem:[#allocation7 + $0x10] sm:$0xff]   ;;  %v357_v24 = vsub.s32 0, %v1534_v23  ;;  %v362_v26 = vsub.s32 1, %v1534_v23  ;;  %v1042_v35 = vld [vmem:[#allocation7 + $0x18] sm:$0xff]   ;;  %v1043_v36 = vld [vmem:[#allocation7 + $0x20] sm:$0xff]   ;;  %p1176_p10 = scmp.ne.s32.totalorder %s1572_s15, %s1175_s16  ;;  %s1259_s17 = smov [#allocation10]  }
  0x8a   : > { %912 = vmatprep.subr.bf16.mxu1 %v1257_v0  ;;  %v340_v25 = vld [vmem:[%s1615_s1] sm:$0x3]  ;;  %v1044_v37 = vld [vmem:[#allocation7 + $0x28] sm:$0xff]   ;;  %v1046_v39 = vld [vmem:[#allocation7 + $0x38] sm:$0xff]   ;;  %s1179_s30 = sshll.u32 %s1259_s17, 4  ;;  %s1180_s30 = int_to_ptr.vmem [resolvable:$false] %s1179_s30 }
  0x8b   : > { %345 = vadd.xlane.f32.xlu0 %v344_v2  ;;  %893 = vmatpush3.bf16.msra.mxu0 %v1032_v4  ;;  %v358_v28 = vrot.slane %v340_v25, %v357_v24  ;;  %v363_v31 = vrot.slane %v340_v25, %v362_v26  ;;  %v1045_v38 = vld [vmem:[#allocation7 + $0x30] sm:$0xff]   ;;  %v1047_v40 = vld [vmem:[#allocation8] sm:$0xff]   ;;  %v1048_v41 = vld [vmem:[#allocation8 + $0x8] sm:$0xff]   ;;  %p1177_p3 = pnand %p1176_p10, %p1454_p5  ;;  %s1181_s9 = scalar_lea.vmem %s1180_s30, 256 }
  0x8c   : > { %894 = vmatprep.subr.bf16.mxu0 %v1257_v0  ;;  %v1049_v42 = vld [vmem:[#allocation8 + $0x10] sm:$0xff]   ;;  %v1050_v56 = vld [vmem:[#allocation8 + $0x18] sm:$0xff]   ;;  %v1051_v57 = vld [vmem:[#allocation8 + $0x20] sm:$0xff]   ;;  %p1182_p12 = scmp.lt.s32.totalorder %s1572_s15, %s1180_s30  ;;  %p1183_p1 = scmp.lt.s32.totalorder %s1181_s9, %s1175_s16 }
  0x8d   : > { %913 = vmatpush3.bf16.msra.mxu1 %v1040_v12  ;;  %v365_v43 = vld [vmem:[%s1619_s5] sm:$0x3]  ;;  %v1052_v58 = vld [vmem:[#allocation8 + $0x28] sm:$0xff]   ;;  %v1054_v60 = vld [vmem:[#allocation8 + $0x38] sm:$0xff]   ;;  %p1178_p7 = pneg %p1177_p3 }
  0x8e   : > { %914 = vmatprep.subr.bf16.mxu1 %v1257_v0  ;;  %v386_v44 = vrot.slane %v365_v43, %v357_v24  ;;  %v1053_v59 = vld [vmem:[#allocation8 + $0x30] sm:$0xff]   ;;  %v500_v61 = vrot.slane %v365_v43, %v362_v26  ;;  %p1184_p2 = por %p1183_p1, %p1182_p12 }
  0x8f   : > { %895 = vmatpush3.bf16.msra.mxu0 %v1033_v5 }
  0x90   : > { %896 = vmatprep.subr.bf16.mxu0 %v1257_v0  ;;  %p1185_p4 = pnand %p1184_p2, %p1178_p7 }
  0x91   : > { %915 = vmatpush3.bf16.msra.mxu1 %v1041_v13 }
  0x92   : > { %916 = vmatprep.subr.bf16.mxu1 %v1257_v0 }
  0x93   : > { %897 = vmatpush3.bf16.msra.mxu0 %v1034_v6 }
  0x94   : > { %898 = vmatprep.subr.bf16.mxu0 %v1257_v0 }
  0x95   : > { %917 = vmatpush3.bf16.msra.mxu1 %v1042_v35 }
  0x96   : > { %918 = vmatprep.subr.bf16.mxu1 %v1257_v0 }
  0x97   : > { %899 = vmatpush3.bf16.msra.mxu0 %v1035_v7 }
  0x98   : > { %900 = vmatprep.subr.bf16.mxu0 %v1257_v0 }
  0x99   : > { %919 = vmatpush3.bf16.msra.mxu1 %v1043_v36 }
  0x9a   : > { %920 = vmatprep.subr.bf16.mxu1 %v1257_v0 }
  0x9b   : > { %901 = vmatpush3.bf16.msra.mxu0 %v1036_v8 }
  0x9c   : > { %902 = vmatprep.subr.bf16.mxu0 %v1257_v0 }
  0x9d   : > { %921 = vmatpush3.bf16.msra.mxu1 %v1044_v37 }
  0x9e   : > { %922 = vmatprep.subr.bf16.mxu1 %v1257_v0 }
  0x9f   : > { %903 = vmatpush3.bf16.msra.mxu0 %v1037_v9  ;;  %v850_v9 = vld [vmem:[%s1620_s6] ss:$0 sm:$0xff] }
  0xa0   : > { %904 = vmatprep.subr.bf16.mxu0 %v1257_v0 }
  0xa1   : > { %923 = vmatpush3.bf16.msra.mxu1 %v1045_v38 }
  0xa2   : > { %924 = vmatprep.subr.bf16.mxu1 %v1257_v0 }
  0xa3   : > { %905 = vmatpush3.bf16.msra.mxu0 %v1038_v10 }
  0xa4   : > { %930 = vmatprep.subr.bf16.mxu0 %v1257_v0 }
  0xa5   : > { %925 = vmatpush3.bf16.msra.mxu1 %v1046_v39 }
 0x114   : > { %v342_v14 = vpop.xlane.xlu0 %341 }
 0x115   : > { %v343_v15 = vmul.f32 0.03125, %v342_v14 }
 0x117   : > { %v348_v17 = vmul.f32 %v343_v15, %v343_v15  ;;  %v351_v27 = vsub.f32 %v339_v1, %v343_v15 }
 0x118   : > { %v346_v16 = vpop.xlane.xlu0 %345 }
 0x119   : > { %v347_v18 = vmul.f32 0.03125, %v346_v16 }
 0x11b   : > { %v349_v19 = vsub.f32 %v347_v18, %v348_v17 }
 0x11d   : > { %v350_v20 = vmax.f32 %v349_v19, 0.0 }
 0x11f   : > { %v352_v22 = vadd.f32 1e-05, %v350_v20 }
 0x121   : > { %1055 = vrsqrt.f32 %v352_v22 }
 0x12b   : > { %v1056_v29 = vpop.eup %1055 }
 0x12c   : > { %v354_v30 = vmul.f32 %v1056_v29, %v351_v27 }
 0x12e   : > { %v359_v32 = vmul.f32 %v358_v28, %v354_v30 }
 0x130   : > { %v364_v33 = vadd.f32 %v363_v31, %v359_v32 }
 0x132   : > { %v366_v34 = vpack.c.bf16 %v364_v33, %v364_v33 }
 0x134   : > { %907 = vmatmul.mubr.bf16.vlgmr.msra.gmra.mrb[0].mxu0 %v366_v34 }
 0x135   : > { %946 = vmatprep.mubr.msk.bf16.mxu0 %vm1258_vm0, %v1257_v0  ;;  %931 = vmatpush3.bf16.msra.mxu0 %v1047_v40 }
 0x136   : > { %932 = vmatprep.subr.bf16.mxu0 %v1257_v0 }
 0x139   : > { %933 = vmatpush3.bf16.msra.mxu0 %v1048_v41 }
 0x13a   : > { %934 = vmatprep.subr.bf16.mxu0 %v1257_v0 }
 0x13d   : > { %935 = vmatpush3.bf16.msra.mxu0 %v1049_v42 }
 0x13e   : > { %936 = vmatprep.subr.bf16.mxu0 %v1257_v0 }
 0x141   : > { %937 = vmatpush3.bf16.msra.mxu0 %v1050_v56 }
 0x142   : > { %938 = vmatprep.subr.bf16.mxu0 %v1257_v0 }
 0x145   : > { %939 = vmatpush3.bf16.msra.mxu0 %v1051_v57 }
 0x146   : > { %940 = vmatprep.subr.bf16.mxu0 %v1257_v0 }
 0x149   : > { %941 = vmatpush3.bf16.msra.mxu0 %v1052_v58 }
 0x14a   : > { %942 = vmatprep.subr.bf16.mxu0 %v1257_v0 }
 0x14d   : > { %943 = vmatpush3.bf16.msra.mxu0 %v1053_v59 }
 0x14e   : > { %944 = vmatprep.subr.bf16.mxu0 %v1257_v0 }
 0x151   : > { %945 = vmatpush3.bf16.msra.mxu0 %v1054_v60 }
 0x207   : > { %v469_v45 = vpop.f32.mrb[0].mxu0 }
 0x208   : > { %v470_v46 = vadd.f32 %v469_v45, %v386_v44  ;;  %v908_v47 = vpop.f32.mrb[1].mxu0 }
 0x209   : > { %v472_v48 = vpop.f32.mrb[2].mxu0 }
 0x20a   : > { %v476_v49 = vmul.f32 0.70710677, %v470_v46  ;;  %v909_v50 = vpop.f32.mrb[3].mxu0  ;;  %v475_v52 = vmul.f32 0.5, %v470_v46 }
 0x20c   : > { %1057 = verf.f32 %v476_v49 }
 0x216   : > { %v1058_v51 = vpop.eup %1057 }
 0x217   : > { %v478_v53 = vadd.f32 1.0, %v1058_v51 }
 0x219   : > { %v479_v54 = vmul.f32 %v478_v53, %v475_v52 }
 0x21b   : > { %v480_v55 = vpack.c.bf16 %v479_v54, %v479_v54 }
 0x21d   : > { %927 = vmatmul.mubr.bf16.vlgmr.msra.gmra.mrb[0].mxu1 %v480_v55 }
 0x2f0   : > { %v583_v62 = vpop.f32.mrb[0].mxu1 }
 0x2f1   : > { %v584_v63 = vadd.f32 %v583_v62, %v500_v61  ;;  %v928_v1 = vpop.f32.mrb[1].mxu1 }
 0x2f2   : > { %v586_v2 = vpop.f32.mrb[2].mxu1 }
 0x2f3   : > { %v590_v3 = vmul.f32 0.70710677, %v584_v63  ;;  %v929_v4 = vpop.f32.mrb[3].mxu1  ;;  %v589_v6 = vmul.f32 0.5, %v584_v63 }
 0x2f5   : > { %1059 = verf.f32 %v590_v3 }
 0x2ff   : > { %v1060_v5 = vpop.eup %1059 }
 0x300   : > { %v592_v7 = vadd.f32 1.0, %v1060_v5 }
 0x302   : > { %v593_v8 = vmul.f32 %v592_v7, %v589_v6 }
 0x304   : > { %v594_v0 = vpack.c.bf16 %v593_v8, %v593_v8 }
 0x306   : > { %947 = vmatmul.mubr.bf16.vlgmr.msra.gmra.mrb[4].mxu0 %v594_v0 }
 0x3d9   : > { %v700_v10 = vpop.f32.mrb[4].mxu0 }
 0x3da   : > { %v701_v11 = vadd.f32 %v850_v9, %v700_v10  ;;  %v948_v12 = vpop.f32.mrb[5].mxu0 }
 0x3db   : > { %v703_v13 = vpop.f32.mrb[6].mxu0 }
 0x3dc   : > { %706 = vst [vmem:[%s337_s20] sm:$0xff] %v701_v11  ;;  %v949_v14 = vpop.f32.mrb[7].mxu0 }
 0x3dd   : > { %1188 = shalt.err (!%p1185_p4)
}
 0x3de   : > { %s1189_s8 = scalar_lea.hbm %s1570_s21, 128  ;;  %s1193_s11 = scalar_lea.hbm %s1621_s7, 256 }
 0x3df   : > { %p1190_p0 = scmp.ne.s32.totalorder %s1570_s21, %s1189_s8  ;;  %p1194_p8 = scmp.lt.u32.totalorder %s1570_s21, %s1621_s7 }
 0x3e0   : > { %p1195_p13 = scmp.lt.u32.totalorder %s1193_s11, %s1189_s8  ;;  %p1197_p10 = scmp.lt.u32.totalorder %s1189_s8, %s1570_s21 }
 0x3e1   : > { %p1191_p9 = pnand %p1190_p0, %p1454_p5 }
 0x3e2   : > { %p1196_p6 = por %p1195_p13, %p1194_p8 }
 0x3e3   : > { %p1192_p11 = pneg %p1191_p9 }
 0x3e4   : > { %p1198_p3 = por %p1197_p10, %p1196_p6 }
 0x3e6   : > { %p1199_p7 = pnand %p1198_p3, %p1192_p11 }
 0x3e8   : > { %1202 = shalt.err (!%p1199_p7)
}
 0x3e9   : > { %964 = dma.vmem_to_hbm [thread:$0]  (%p1454_p5), %s1572_s15, 128, %s1570_s21, %s708_s28  }
 0x3ea PF: > { %s1641_s20 = sld [smem:[#allocation15_spill]]  ;;  %s733_s29 = sand.u32 1, %s1237_s24  }
 0x3eb   : > { %p1643_p1 = scmp.ge.s32.totalorder %s1249_s27, 2  ;;  %s734_s12 = scalar_lea.sflag [#allocation4], %s733_s29 }
 0x3f0   : > { %p1642_p12 = scmp.ne.s32.totalorder %s1641_s20, 0 }
 0x3f2   : > { %p981_p2 = pnand %p1643_p1, %p1642_p12 }
 0x3f4   : > { %1232 = dma.done.wait (!%p981_p2), %s734_s12, 128  }
 0x3f5   : > { %1234 = vsyncadd (!%p981_p2), %s734_s12, 4294967168  ;;  %p22_p4 = scmp.ge.s32.totalorder %s1440_s22, 4   ;;  %s1644_s24 = smov %s1241_s25 }
 0x3f6   : > { %s1645_s25 = smov %s1245_s26  ;;  %s1646_s26 = smov %s1450_s18 }
 0x3f7   : > { %s1647_s27 = smov %s1440_s22  ;;  %24 = sbr.rel (!%p22_p4) target bundleno = 7 (0x7), region = 105 }
 0x3fe   :  { %739 = vsyncpa [#allocation3], 1 }
 0x3ff   :  { %741 = vsyncpa [#allocation3 + $0x1], 1 }
 0x400   :  { %742 = vsyncpa [#allocation6], 1 }
 0x401   :  { %743 = vsyncpa [#allocation9], 1 }
 0x402   :  { %744 = vsyncpa [#allocation4], 1 }
 0x403   :  { %746 = vsyncpa [#allocation4 + $0x1], 1 }

</bundles_post_ra>
